<compile_context>
chip_gen: v7x
topology: tpu7x:2x2x1
jax: 0.10.0
libtpu: 0.0.40
codegen_flags: <defaults>
</compile_context>

<pallas_src>
import functools
import math

import jax
import jax.numpy as jnp
from jax.experimental import pallas as pl
from jax.experimental.pallas import tpu as pltpu

_NEG_BIG = -1e30


def _default_vmem_limit():
    # Per-generation VMEM budget: ~75% of physical (v7x: 64 MiB -> 48 MiB,
    # v5e/v6e: 128 MiB -> 96 MiB), capped at 100 MiB.
    try:
        cap = pltpu.get_tpu_info().vmem_capacity_bytes
        return min(int(cap * 3 // 4), 100 * 1024 * 1024)
    except Exception:
        return 64 * 1024 * 1024


_VMEM_LIMIT = _default_vmem_limit()


def _round_up(x, m):
    return (x + m - 1) // m * m


# ----------------------------------------------------------------------------
# SRU layer kernel: per-(batch-block, time-chunk) fused gate matmul + recurrence.
# ----------------------------------------------------------------------------
def sru_layer_kernel(x_ref, w_ref, b_ref, h_ref, c_ref, g_scr,
                     *, t_chunk, bb, dim, unroll):
    """One SRU layer (v1, identity activation, rescale=False).

    x_ref : (Tc, bb, D) bf16 input chunk      w_ref : (D, 3D) bf16 fused [Wx | Wf | Wr]
    b_ref : (1, 3D) f32 fused [0 | bf | br]   h_ref : (Tc, bb, D) bf16 output chunk
    c_ref : (bb, D) f32 cell state, resident across the time axis (constant index map);
            doubles as the carried recurrence state and the final-hidden output.
    g_scr : (Tc, bb, 3D) f32 VMEM scratch holding the fused gate pre-activations.
    """
    # init_hidden(): zero cell state at the first time chunk of each batch block.
    @pl.when(pl.program_id(1) == 0)
    def _():
        c_ref[...] = jnp.zeros_like(c_ref)

    # One fused MXU matmul for all three gates over the whole chunk (f32 accumulation);
    # the result goes to a VMEM scratch so the recurrence indexes refs instead of
    # keeping the whole chunk live in vregs.
    x2d = x_ref[...].reshape(t_chunk * bb, dim)
    g_scr[...] = (jnp.dot(x2d, w_ref[...], preferred_element_type=jnp.float32)
                  + b_ref[...]).reshape(t_chunk, bb, 3 * dim)

    def step(t, c):
        g = g_scr[t]                                       # (bb, 3D) f32
        x_t = g[:, 0:dim]
        f_t = jax.nn.sigmoid(g[:, dim:2 * dim])
        r_t = jax.nn.sigmoid(g[:, 2 * dim:3 * dim])
        c_new = f_t * c + (1.0 - f_t) * x_t
        # highway: use_tanh=0 -> g() is identity; highway term uses the (upcast) input.
        h_ref[t] = (r_t * c_new
                    + (1.0 - r_t) * x_ref[t].astype(jnp.float32)).astype(h_ref.dtype)
        return c_new

    c_ref[...] = jax.lax.fori_loop(0, t_chunk, step, c_ref[...], unroll=unroll)


def sru_layer(x_tbd, w_fused_bf16, b_fused, *, t_chunk=None, batch_block=None):
    """x_tbd: (T, B, D) bf16.  Returns (h: (T, B, D) bf16, c_final: (B, D) f32)."""
    t_len, batch, dim = x_tbd.shape
    bb = batch if batch_block is None else batch_block
    assert batch % bb == 0 and (bb == batch or bb % 8 == 0)
    n_bb = batch // bb

    if t_chunk is None:
        # Aim for >=256 matmul rows per chunk, subject to the VMEM budget.
        target = max(1, -(-256 // bb))
        budget = int(_VMEM_LIMIT * 0.7)
        t_chunk = 1
        for cand in range(1, t_len + 1):
            if t_len % cand:
                continue
            if cand > target:
                break
            est = (cand * bb * 3 * dim * 4          # gate scratch (f32)
                   + 4 * cand * bb * dim * 2        # x + h chunks, double-buffered, bf16
                   + 2 * dim * 3 * dim * 2          # fused weight (assume double-buffered)
                   + 2 * bb * dim * 4)              # resident cell state
            if est <= budget:
                t_chunk = cand
    assert t_len % t_chunk == 0
    n_chunks = t_len // t_chunk
    unroll = max(1, min(8, t_chunk))

    kernel = functools.partial(sru_layer_kernel, t_chunk=t_chunk, bb=bb, dim=dim,
                               unroll=unroll)
    return pl.pallas_call(
        kernel,
        grid=(n_bb, n_chunks),
        out_shape=(jax.ShapeDtypeStruct((t_len, batch, dim), jnp.bfloat16),
                   jax.ShapeDtypeStruct((batch, dim), jnp.float32)),
        in_specs=[pl.BlockSpec((t_chunk, bb, dim), lambda bi, ti: (ti, bi, 0)),
                  # TODO(synk): single-buffer the grid-invariant fused weight
                  # (pipeline_mode=pl.Buffered(1)) once verified on the target jax build.
                  pl.BlockSpec((dim, 3 * dim), lambda bi, ti: (0, 0)),
                  pl.BlockSpec((1, 3 * dim), lambda bi, ti: (0, 0))],
        out_specs=(pl.BlockSpec((t_chunk, bb, dim), lambda bi, ti: (ti, bi, 0)),
                   pl.BlockSpec((bb, dim), lambda bi, ti: (bi, 0))),
        scratch_shapes=[pltpu.VMEM((t_chunk, bb, 3 * dim), jnp.float32)],
        compiler_params=pltpu.CompilerParams(
            dimension_semantics=("parallel", "arbitrary"),   # batch || , time sequential
            vmem_limit_bytes=_VMEM_LIMIT),
    )(x_tbd, w_fused_bf16, b_fused)


# ----------------------------------------------------------------------------
# Decoder kernel: tied-weight linear + single-pass online log_softmax.
# Grid = (row blocks, vocab blocks).  The (tm, V_pad) logits slab for the current row
# block is the resident output block; raw logits are written per vocab block while the
# running max/sum accumulates in VMEM scratch, and the last vocab step normalizes in
# place (no logits recompute).
# ----------------------------------------------------------------------------
def decoder_logprob_kernel(h_ref, w_ref, b_ref, out_ref, m_scr, z_scr, *, tv):
    j = pl.program_id(1)

    @pl.when(j == 0)
    def _():
        m_scr[...] = jnp.full_like(m_scr, -jnp.inf)
        z_scr[...] = jnp.zeros_like(z_scr)

    logits = (jnp.dot(h_ref[...], w_ref[...], preferred_element_type=jnp.float32)
              + b_ref[...])                                  # (tm, tv) f32

    col = pl.multiple_of(j * tv, 128)
    out_ref[:, pl.ds(col, tv)] = logits                      # raw logits, normalized below

    m_prev = m_scr[...]
    m_new = jnp.maximum(m_prev, jnp.max(logits, axis=-1, keepdims=True))
    z_scr[...] = (z_scr[...] * jnp.exp(m_prev - m_new)
                  + jnp.sum(jnp.exp(logits - m_new), axis=-1, keepdims=True))
    m_scr[...] = m_new

    @pl.when(j == pl.num_programs(1) - 1)
    def _():
        lse = m_scr[...] + jnp.log(z_scr[...])
        out_ref[...] = out_ref[...] - lse


def decoder_logprob(h2d, enc_w, dec_b, *, tm=256, tv=512):
    """h2d: (N, D) bf16, enc_w: (V, D) f32 tied weight, dec_b: (1, V) f32 -> (N, V) f32."""
    n_rows, dim = h2d.shape
    vocab = enc_w.shape[0]

    tv_eff = min(tv, _round_up(vocab, 128))
    v_pad = _round_up(vocab, tv_eff)
    tm_eff = min(_round_up(tm, 8), _round_up(n_rows, 8))
    # Clamp the row tile so the resident logits slab + streamed weight/h blocks fit the
    # per-generation VMEM budget (e.g. tm shrinks on v7x's 64 MiB VMEM).
    budget = int(_VMEM_LIMIT * 0.7)
    while tm_eff > 8:
        est = (2 * tm_eff * v_pad * 4           # resident output slab (assume 2 bufs)
               + 2 * tv_eff * dim * 2           # weight block, double-buffered, bf16
               + 2 * tm_eff * dim * 2           # h block, double-buffered, bf16
               + 2 * tv_eff * 4)                # bias block
        if est <= budget:
            break
        tm_eff = max(8, _round_up(tm_eff // 2, 8))
    n_pad = _round_up(n_rows, tm_eff)

    if n_pad != n_rows:
        h2d = jnp.concatenate([h2d, jnp.zeros((n_pad - n_rows, dim), h2d.dtype)], axis=0)
    w_pad, b_pad = enc_w, dec_b
    if v_pad != vocab:
        # Padded vocab columns: zero weight rows + large-negative bias so they are masked
        # out of the log-softmax normalizer (their exp underflows to exactly 0).
        w_pad = jnp.concatenate([enc_w, jnp.zeros((v_pad - vocab, dim), enc_w.dtype)], axis=0)
        b_pad = jnp.concatenate([dec_b, jnp.full((1, v_pad - vocab), _NEG_BIG, dec_b.dtype)],
                                axis=1)
    # One-time (V, D) -> (D, V) transpose + bf16 cast in the wrapper: MXU-native
    # orientation, no per-block in-kernel transpose of the tied weight.
    w_dv = w_pad.T.astype(jnp.bfloat16)

    nm, nv = n_pad // tm_eff, v_pad // tv_eff
    out = pl.pallas_call(
        functools.partial(decoder_logprob_kernel, tv=tv_eff),
        grid=(nm, nv),
        out_shape=jax.ShapeDtypeStruct((n_pad, v_pad), jnp.float32),
        in_specs=[pl.BlockSpec((tm_eff, dim), lambda i, j: (i, 0)),
                  pl.BlockSpec((dim, tv_eff), lambda i, j: (0, j)),
                  pl.BlockSpec((1, tv_eff), lambda i, j: (0, j))],
        out_specs=pl.BlockSpec((tm_eff, v_pad), lambda i, j: (i, 0)),
        scratch_shapes=[pltpu.VMEM((tm_eff, 1), jnp.float32),
                        pltpu.VMEM((tm_eff, 1), jnp.float32)],
        compiler_params=pltpu.CompilerParams(
            dimension_semantics=("parallel", "arbitrary"),
            vmem_limit_bytes=_VMEM_LIMIT),
    )(h2d, w_dv, b_pad)
    return out[:n_rows, :vocab]


# ----------------------------------------------------------------------------
# Parameter init (deterministic, mirrors the module's init_weights / SRU init).
# Gate weights are pre-fused as (D, 3D) = [Wx | Wf | Wr], biases as (1, 3D) = [0 | bf | br]
# with highway_bias on the reset-gate bias (upstream sru convention).
# ----------------------------------------------------------------------------
def init_params(key, num_words, dim, n_layers, highway_bias=-3.0):
    keys = jax.random.split(key, 1 + n_layers)
    enc_w = jax.random.uniform(keys[0], (num_words, dim), jnp.float32, -0.1, 0.1)
    scale = 1.0 / math.sqrt(dim)
    layers = []
    for l in range(n_layers):
        w3 = jax.random.uniform(keys[1 + l], (dim, 3 * dim), jnp.float32, -scale, scale)
        b3 = jnp.concatenate([jnp.zeros((1, dim), jnp.float32),          # candidate (no bias)
                              jnp.zeros((1, dim), jnp.float32),          # forget bias
                              jnp.full((1, dim), highway_bias, jnp.float32)],  # reset bias
                             axis=1)
        layers.append(dict(w3=w3, b3=b3))
    dec_b = jnp.zeros((1, num_words), jnp.float32)  # decoder.bias.zero_()
    return dict(enc_w=enc_w, layers=layers, dec_b=dec_b)  # decoder.weight tied to enc_w


# ----------------------------------------------------------------------------
# Full forward pass (eval path). Returns (log_prob, raw_hiddens), as the module does.
# ----------------------------------------------------------------------------
def forward(params, x_ids, *, t_chunk=None, batch_block=None, dec_tm=256, dec_tv=512):
    T, B = x_ids.shape
    enc_w = params['enc_w']                              # (V, D) f32 (tied weight)
    V, D = enc_w.shape
    # Embedding lookup (embedded_dropout / LockedDropout are identity in eval).
    # Inter-layer activations carried in bf16 (matmul dtype; halves HBM round trips).
    # TODO(synk): fuse this gather into the first SRU layer (PrefetchScalarGridSpec +
    # pl.Element row indexing) to avoid materializing the (T, B, D) embedding in HBM.
    raw_output = jnp.take(enc_w, x_ids.reshape(-1), axis=0).reshape(T, B, D)
    raw_output = raw_output.astype(jnp.bfloat16)
    raw_hiddens = []
    # TODO(synk): cross-layer fusion (keep the time chunk resident in VMEM across all L
    # layers with the L fused weights loaded) is left for a follow-up.
    for layer in params['layers']:
        raw_output, c_fin = sru_layer(raw_output,
                                      layer['w3'].astype(jnp.bfloat16),
                                      layer['b3'],
                                      t_chunk=t_chunk, batch_block=batch_block)
        raw_hiddens.append(c_fin.reshape(1, B, D))
    # TODO(synk): multi-cluster SplitCrossEntropyLoss adaptive softmax not implemented;
    # a single cutoff == full log_softmax, which is what this kernel computes.
    # TODO(synk): optionally fuse the target-token gather (NLL) to avoid the (N, V) write.
    log_prob = decoder_logprob(raw_output.reshape(T * B, D), enc_w, params['dec_b'],
                               tm=dec_tm, tv=dec_tv)
    return log_prob, raw_hiddens


# ----------------------------------------------------------------------------
# Pure-JAX reference (mirrors the kernels' bf16-activation / f32-recurrence policy).
# ----------------------------------------------------------------------------
def forward_ref(params, x_ids):
    T, B = x_ids.shape
    enc_w = params['enc_w']
    V, D = enc_w.shape
    x = jnp.take(enc_w, x_ids.reshape(-1), axis=0).reshape(T, B, D).astype(jnp.bfloat16)
    hiddens = []
    for layer in params['layers']:
        g = jnp.einsum('tbd,de->tbe', x, layer['w3'].astype(jnp.bfloat16),
                       preferred_element_type=jnp.float32) + layer['b3']
        xt = g[..., :D]
        f = jax.nn.sigmoid(g[..., D:2 * D])
        r = jax.nn.sigmoid(g[..., 2 * D:])
        xf = x.astype(jnp.float32)
        c = jnp.zeros((B, D), jnp.float32)
        hs = []
        for t in range(T):
            c = f[t] * c + (1.0 - f[t]) * xt[t]
            hs.append(r[t] * c + (1.0 - r[t]) * xf[t])
        x = jnp.stack(hs, 0).astype(jnp.bfloat16)
        hiddens.append(c[None])
    logits = jnp.dot(x.reshape(T * B, D), enc_w.astype(jnp.bfloat16).T,
                     preferred_element_type=jnp.float32) + params['dec_b']
    return jax.nn.log_softmax(logits, axis=-1), hiddens


if __name__ == "__main__":
    # seq, batch, embedding_dim==hidden, vocab (not a multiple of 128 -> exercises the
    # padded/masked vocab path), n_layers.
    T, B, D, V, L = 8, 2, 32, 320, 3
    key = jax.random.PRNGKey(0)
    kp, kx = jax.random.split(key)
    params = init_params(kp, num_words=V, dim=D, n_layers=L, highway_bias=-3.0)
    x_ids = jax.random.randint(kx, (T, B), 0, V, dtype=jnp.int32)

    ref_lp, ref_h = forward_ref(params, x_ids)

    # Run 1: default (perf-tuned, auto-clamped to the small problem) tiles.
    fwd = jax.jit(forward)
    log_prob, raw_hiddens = fwd(params, x_ids)
    jax.block_until_ready(log_prob)
    assert log_prob.shape == (T * B, V)
    assert len(raw_hiddens) == L and raw_hiddens[0].shape == (1, B, D)
    assert bool(jnp.allclose(log_prob, ref_lp, atol=1e-2, rtol=1e-2))
    for a, b_ in zip(raw_hiddens, ref_h):
        assert bool(jnp.allclose(a, b_, atol=1e-2, rtol=1e-2))

    # Run 2: small explicit tiles to exercise multi-block grids (2 time chunks,
    # 2 decoder row blocks, 3 vocab blocks incl. a partially padded one).
    fwd2 = jax.jit(functools.partial(forward, t_chunk=4, dec_tm=8, dec_tv=128))
    log_prob2, raw_hiddens2 = fwd2(params, x_ids)
    jax.block_until_ready(log_prob2)
    assert bool(jnp.allclose(log_prob2, ref_lp, atol=1e-2, rtol=1e-2))
    for a, b_ in zip(raw_hiddens2, ref_h):
        assert bool(jnp.allclose(a, b_, atol=1e-2, rtol=1e-2))

    print("KERNEL_OK")
</pallas_src>

<mosaic_0001>
module attributes {stable_mosaic.version = 11 : i64} {
  func.func @decoder_logprob_kernel(%arg0: i32, %arg1: i32, %arg2: memref<16x32xbf16, #tpu.memory_space<vmem>>, %arg3: memref<32x384xbf16, #tpu.memory_space<vmem>>, %arg4: memref<1x384xf32, #tpu.memory_space<vmem>>, %arg5: memref<16x384xf32, #tpu.memory_space<vmem>>, %arg6: memref<16x1xf32, #tpu.memory_space<vmem>>, %arg7: memref<16x1xf32, #tpu.memory_space<vmem>>) attributes {dimension_semantics = [#tpu.dimension_semantics<parallel>, #tpu.dimension_semantics<arbitrary>], iteration_bounds = array<i64: 1, 1>, scalar_prefetch = 0 : i64, scratch_operands = 2 : i64, tpu.core_type = #tpu.core_type<tc>, window_params = [{transform_indices = @transform_0, window_bounds = array<i64: 16, 32>}, {transform_indices = @transform_1, window_bounds = array<i64: 32, 384>}, {transform_indices = @transform_2, window_bounds = array<i64: 1, 384>}, {transform_indices = @transform_3, window_bounds = array<i64: 16, 384>}]} {
    %c0_i32 = arith.constant 0 : i32
    %0 = arith.cmpi eq, %arg1, %c0_i32 : i32
    %1 = arith.extui %0 : i1 to i32
    %c0_i32_0 = arith.constant 0 : i32
    %2 = arith.cmpi ne, %1, %c0_i32_0 : i32
    scf.if %2 {
      %cst_19 = arith.constant 0xFF800000 : f32
      %32 = vector.broadcast %cst_19 : f32 to vector<16x1xf32>
      %c0_20 = arith.constant 0 : index
      %c0_21 = arith.constant 0 : index
      %33 = vector.load %arg6[%c0_20, %c0_21] : memref<16x1xf32, #tpu.memory_space<vmem>>, vector<16x1xf32>
      tpu.vector_store %arg6[%c0_20, %c0_21], %32 {strides = array<i32>} : memref<16x1xf32, #tpu.memory_space<vmem>>, vector<16x1xf32>,
      %cst_22 = arith.constant 0.000000e+00 : f32
      %34 = vector.broadcast %cst_22 : f32 to vector<16x1xf32>
      %c0_23 = arith.constant 0 : index
      %c0_24 = arith.constant 0 : index
      %35 = vector.load %arg7[%c0_23, %c0_24] : memref<16x1xf32, #tpu.memory_space<vmem>>, vector<16x1xf32>
      tpu.vector_store %arg7[%c0_23, %c0_24], %34 {strides = array<i32>} : memref<16x1xf32, #tpu.memory_space<vmem>>, vector<16x1xf32>,
    } else {
    }
    %c0 = arith.constant 0 : index
    %c0_1 = arith.constant 0 : index
    %3 = vector.load %arg2[%c0, %c0_1] : memref<16x32xbf16, #tpu.memory_space<vmem>>, vector<16x32xbf16>
    %c0_2 = arith.constant 0 : index
    %c0_3 = arith.constant 0 : index
    %4 = vector.load %arg3[%c0_2, %c0_3] : memref<32x384xbf16, #tpu.memory_space<vmem>>, vector<32x384xbf16>
    %cst = arith.constant dense<0.000000e+00> : vector<16x384xf32>
    %5 = tpu.matmul %3, %4, %cst {dimension_numbers = #tpu.dot_dimension_numbers<[1], [0], [0], [1], [0, 0, 1, 1], [], []>} : vector<16x32xbf16>, vector<32x384xbf16>, vector<16x384xf32> -> vector<16x384xf32>
    %c0_4 = arith.constant 0 : index
    %c0_5 = arith.constant 0 : index
    %6 = vector.load %arg4[%c0_4, %c0_5] : memref<1x384xf32, #tpu.memory_space<vmem>>, vector<1x384xf32>
    %7 = vector.broadcast %6 : vector<1x384xf32> to vector<16x384xf32>
    %8 = arith.addf %5, %7 : vector<16x384xf32>
    %c384_i32 = arith.constant 384 : i32
    %9 = arith.muli %arg1, %c384_i32 : i32
    %10 = tpu.assume_multiple %9, 128 : i32
    %c0_6 = arith.constant 0 : index
    %11 = arith.index_cast %10 : i32 to index
    %12 = vector.load %arg5[%c0_6, %11] : memref<16x384xf32, #tpu.memory_space<vmem>>, vector<16x384xf32>
    tpu.vector_store %arg5[%c0_6, %11], %8 {strides = array<i32>} : memref<16x384xf32, #tpu.memory_space<vmem>>, vector<16x384xf32>,
    %c0_7 = arith.constant 0 : index
    %c0_8 = arith.constant 0 : index
    %13 = vector.load %arg6[%c0_7, %c0_8] : memref<16x1xf32, #tpu.memory_space<vmem>>, vector<16x1xf32>
    %cst_9 = arith.constant dense<0xFF800000> : vector<16xf32>
    %14 = vector.multi_reduction <maximumf>, %8, %cst_9 [1] : vector<16x384xf32> to vector<16xf32>
    %15 = vector.shape_cast %14 : vector<16xf32> to vector<16x1xf32>
    %16 = arith.maximumf %13, %15 : vector<16x1xf32>
    %c0_10 = arith.constant 0 : index
    %c0_11 = arith.constant 0 : index
    %17 = vector.load %arg7[%c0_10, %c0_11] : memref<16x1xf32, #tpu.memory_space<vmem>>, vector<16x1xf32>
    %18 = arith.subf %13, %16 : vector<16x1xf32>
    %19 = math.exp %18 : vector<16x1xf32>
    %20 = arith.mulf %17, %19 : vector<16x1xf32>
    %21 = vector.broadcast %16 : vector<16x1xf32> to vector<16x384xf32>
    %22 = arith.subf %8, %21 : vector<16x384xf32>
    %23 = math.exp %22 : vector<16x384xf32>
    %cst_12 = arith.constant dense<0.000000e+00> : vector<16xf32>
    %24 = vector.multi_reduction <add>, %23, %cst_12 [1] : vector<16x384xf32> to vector<16xf32>
    %25 = vector.shape_cast %24 : vector<16xf32> to vector<16x1xf32>
    %26 = arith.addf %20, %25 : vector<16x1xf32>
    %c0_13 = arith.constant 0 : index
    %c0_14 = arith.constant 0 : index
    %27 = vector.load %arg7[%c0_13, %c0_14] : memref<16x1xf32, #tpu.memory_space<vmem>>, vector<16x1xf32>
    tpu.vector_store %arg7[%c0_13, %c0_14], %26 {strides = array<i32>} : memref<16x1xf32, #tpu.memory_space<vmem>>, vector<16x1xf32>,
    %c0_15 = arith.constant 0 : index
    %c0_16 = arith.constant 0 : index
    %28 = vector.load %arg6[%c0_15, %c0_16] : memref<16x1xf32, #tpu.memory_space<vmem>>, vector<16x1xf32>
    tpu.vector_store %arg6[%c0_15, %c0_16], %16 {strides = array<i32>} : memref<16x1xf32, #tpu.memory_space<vmem>>, vector<16x1xf32>,
    %c0_i32_17 = arith.constant 0 : i32
    %29 = arith.cmpi eq, %arg1, %c0_i32_17 : i32
    %30 = arith.extui %29 : i1 to i32
    %c0_i32_18 = arith.constant 0 : i32
    %31 = arith.cmpi ne, %30, %c0_i32_18 : i32
    scf.if %31 {
      %c0_19 = arith.constant 0 : index
      %c0_20 = arith.constant 0 : index
      %32 = vector.load %arg6[%c0_19, %c0_20] : memref<16x1xf32, #tpu.memory_space<vmem>>, vector<16x1xf32>
      %c0_21 = arith.constant 0 : index
      %c0_22 = arith.constant 0 : index
      %33 = vector.load %arg7[%c0_21, %c0_22] : memref<16x1xf32, #tpu.memory_space<vmem>>, vector<16x1xf32>
      %34 = math.log %33 : vector<16x1xf32>
      %35 = arith.addf %32, %34 : vector<16x1xf32>
      %c0_23 = arith.constant 0 : index
      %c0_24 = arith.constant 0 : index
      %36 = vector.load %arg5[%c0_23, %c0_24] : memref<16x384xf32, #tpu.memory_space<vmem>>, vector<16x384xf32>
      %37 = vector.broadcast %35 : vector<16x1xf32> to vector<16x384xf32>
      %38 = arith.subf %36, %37 : vector<16x384xf32>
      %c0_25 = arith.constant 0 : index
      %c0_26 = arith.constant 0 : index
      %39 = vector.load %arg5[%c0_25, %c0_26] : memref<16x384xf32, #tpu.memory_space<vmem>>, vector<16x384xf32>
      tpu.vector_store %arg5[%c0_25, %c0_26], %38 {strides = array<i32>} : memref<16x384xf32, #tpu.memory_space<vmem>>, vector<16x384xf32>,
    } else {
    }
    return
  }
  func.func @transform_0(%arg0: i32, %arg1: i32) -> (i32, i32) {
    %c0_i32 = arith.constant 0 : i32
    %c0_i32_0 = arith.constant 0 : i32
    return %arg0, %c0_i32 : i32, i32
  }
  func.func @transform_1(%arg0: i32, %arg1: i32) -> (i32, i32) {
    %c0_i32 = arith.constant 0 : i32
    %c0_i32_0 = arith.constant 0 : i32
    return %c0_i32, %arg1 : i32, i32
  }
  func.func @transform_2(%arg0: i32, %arg1: i32) -> (i32, i32) {
    %c0_i32 = arith.constant 0 : i32
    %c0_i32_0 = arith.constant 0 : i32
    return %c0_i32, %arg1 : i32, i32
  }
  func.func @transform_3(%arg0: i32, %arg1: i32) -> (i32, i32) {
    %c0_i32 = arith.constant 0 : i32
    %c0_i32_0 = arith.constant 0 : i32
    return %arg0, %c0_i32 : i32, i32
  }
}

module attributes {stable_mosaic.version = 11 : i64} {
  func.func @sru_layer_kernel(%arg0: i32, %arg1: i32, %arg2: memref<8x2x32xbf16, #tpu.memory_space<vmem>>, %arg3: memref<32x96xbf16, #tpu.memory_space<vmem>>, %arg4: memref<1x96xf32, #tpu.memory_space<vmem>>, %arg5: memref<8x2x32xbf16, #tpu.memory_space<vmem>>, %arg6: memref<2x32xf32, #tpu.memory_space<vmem>>, %arg7: memref<8x2x96xf32, #tpu.memory_space<vmem>>) attributes {dimension_semantics = [#tpu.dimension_semantics<parallel>, #tpu.dimension_semantics<arbitrary>], iteration_bounds = array<i64: 1, 1>, scalar_prefetch = 0 : i64, scratch_operands = 1 : i64, tpu.core_type = #tpu.core_type<tc>, window_params = [{transform_indices = @transform_0, window_bounds = array<i64: 8, 2, 32>}, {pipeline_mode = #tpu.pipeline_mode<synchronous>, transform_indices = @transform_1, window_bounds = array<i64: 32, 96>}, {pipeline_mode = #tpu.pipeline_mode<synchronous>, transform_indices = @transform_2, window_bounds = array<i64: 1, 96>}, {transform_indices = @transform_3, window_bounds = array<i64: 8, 2, 32>}, {transform_indices = @transform_4, window_bounds = array<i64: 2, 32>}]} {
    %c0_i32 = arith.constant 0 : i32
    %0 = arith.cmpi eq, %arg1, %c0_i32 : i32
    %1 = arith.extui %0 : i1 to i32
    %c0_i32_0 = arith.constant 0 : i32
    %2 = arith.cmpi ne, %1, %c0_i32_0 : i32
    scf.if %2 {
      %cst_95 = arith.constant 0.000000e+00 : f32
      %294 = vector.broadcast %cst_95 : f32 to vector<2x32xf32>
      %c0_96 = arith.constant 0 : index
      %c0_97 = arith.constant 0 : index
      %295 = vector.load %arg6[%c0_96, %c0_97] : memref<2x32xf32, #tpu.memory_space<vmem>>, vector<2x32xf32>
      tpu.vector_store %arg6[%c0_96, %c0_97], %294 {strides = array<i32>} : memref<2x32xf32, #tpu.memory_space<vmem>>, vector<2x32xf32>,
    } else {
    }
    %c0 = arith.constant 0 : index
    %c0_1 = arith.constant 0 : index
    %c0_2 = arith.constant 0 : index
    %3 = vector.load %arg2[%c0, %c0_1, %c0_2] : memref<8x2x32xbf16, #tpu.memory_space<vmem>>, vector<8x2x32xbf16>
    %4 = vector.shape_cast %3 : vector<8x2x32xbf16> to vector<16x32xbf16>
    %c0_3 = arith.constant 0 : index
    %c0_4 = arith.constant 0 : index
    %5 = vector.load %arg3[%c0_3, %c0_4] : memref<32x96xbf16, #tpu.memory_space<vmem>>, vector<32x96xbf16>
    %cst = arith.constant dense<0.000000e+00> : vector<16x96xf32>
    %6 = tpu.matmul %4, %5, %cst {dimension_numbers = #tpu.dot_dimension_numbers<[1], [0], [0], [1], [0, 0, 1, 1], [], []>} : vector<16x32xbf16>, vector<32x96xbf16>, vector<16x96xf32> -> vector<16x96xf32>
    %c0_5 = arith.constant 0 : index
    %c0_6 = arith.constant 0 : index
    %7 = vector.load %arg4[%c0_5, %c0_6] : memref<1x96xf32, #tpu.memory_space<vmem>>, vector<1x96xf32>
    %8 = vector.broadcast %7 : vector<1x96xf32> to vector<16x96xf32>
    %9 = arith.addf %6, %8 : vector<16x96xf32>
    %10 = vector.shape_cast %9 : vector<16x96xf32> to vector<8x2x96xf32>
    %c0_7 = arith.constant 0 : index
    %c0_8 = arith.constant 0 : index
    %c0_9 = arith.constant 0 : index
    %11 = vector.load %arg7[%c0_7, %c0_8, %c0_9] : memref<8x2x96xf32, #tpu.memory_space<vmem>>, vector<8x2x96xf32>
    tpu.vector_store %arg7[%c0_7, %c0_8, %c0_9], %10 {strides = array<i32>} : memref<8x2x96xf32, #tpu.memory_space<vmem>>, vector<8x2x96xf32>,
    %c0_10 = arith.constant 0 : index
    %c0_11 = arith.constant 0 : index
    %12 = vector.load %arg6[%c0_10, %c0_11] : memref<2x32xf32, #tpu.memory_space<vmem>>, vector<2x32xf32>
    %c0_i32_12 = arith.constant 0 : i32
    %13 = arith.index_cast %c0_i32_12 : i32 to index
    %c0_13 = arith.constant 0 : index
    %c0_14 = arith.constant 0 : index
    %14 = vector.load %arg7[%13, %c0_13, %c0_14] : memref<8x2x96xf32, #tpu.memory_space<vmem>>, vector<1x2x96xf32>
    %15 = vector.shape_cast %14 : vector<1x2x96xf32> to vector<2x96xf32>
    %16 = vector.extract_strided_slice %15 {offsets = [0, 0], sizes = [2, 32], strides = [1, 1]} : vector<2x96xf32> to vector<2x32xf32>
    %17 = vector.extract_strided_slice %15 {offsets = [0, 32], sizes = [2, 32], strides = [1, 1]} : vector<2x96xf32> to vector<2x32xf32>
    %18 = arith.negf %17 : vector<2x32xf32>
    %19 = math.exp %18 : vector<2x32xf32>
    %cst_15 = arith.constant 1.000000e+00 : f32
    %20 = vector.broadcast %cst_15 : f32 to vector<2x32xf32>
    %21 = arith.addf %20, %19 : vector<2x32xf32>
    %22 = arith.divf %20, %21 : vector<2x32xf32>
    %23 = vector.extract_strided_slice %15 {offsets = [0, 64], sizes = [2, 32], strides = [1, 1]} : vector<2x96xf32> to vector<2x32xf32>
    %24 = arith.negf %23 : vector<2x32xf32>
    %25 = math.exp %24 : vector<2x32xf32>
    %cst_16 = arith.constant 1.000000e+00 : f32
    %26 = vector.broadcast %cst_16 : f32 to vector<2x32xf32>
    %27 = arith.addf %26, %25 : vector<2x32xf32>
    %28 = arith.divf %26, %27 : vector<2x32xf32>
    %29 = arith.mulf %22, %12 : vector<2x32xf32>
    %cst_17 = arith.constant 1.000000e+00 : f32
    %30 = vector.broadcast %cst_17 : f32 to vector<2x32xf32>
    %31 = arith.subf %30, %22 : vector<2x32xf32>
    %32 = arith.mulf %31, %16 : vector<2x32xf32>
    %33 = arith.addf %29, %32 : vector<2x32xf32>
    %34 = arith.mulf %28, %33 : vector<2x32xf32>
    %cst_18 = arith.constant 1.000000e+00 : f32
    %35 = vector.broadcast %cst_18 : f32 to vector<2x32xf32>
    %36 = arith.subf %35, %28 : vector<2x32xf32>
    %37 = arith.index_cast %c0_i32_12 : i32 to index
    %c0_19 = arith.constant 0 : index
    %c0_20 = arith.constant 0 : index
    %38 = vector.load %arg2[%37, %c0_19, %c0_20] : memref<8x2x32xbf16, #tpu.memory_space<vmem>>, vector<1x2x32xbf16>
    %39 = vector.shape_cast %38 : vector<1x2x32xbf16> to vector<2x32xbf16>
    %40 = arith.extf %39 : vector<2x32xbf16> to vector<2x32xf32>
    %41 = arith.mulf %36, %40 : vector<2x32xf32>
    %42 = arith.addf %34, %41 : vector<2x32xf32>
    %43 = arith.truncf %42 : vector<2x32xf32> to vector<2x32xbf16>
    %44 = arith.index_cast %c0_i32_12 : i32 to index
    %c0_21 = arith.constant 0 : index
    %c0_22 = arith.constant 0 : index
    %45 = vector.load %arg5[%44, %c0_21, %c0_22] : memref<8x2x32xbf16, #tpu.memory_space<vmem>>, vector<1x2x32xbf16>
    %46 = vector.shape_cast %45 : vector<1x2x32xbf16> to vector<2x32xbf16>
    %47 = vector.shape_cast %43 : vector<2x32xbf16> to vector<1x2x32xbf16>
    tpu.vector_store %arg5[%44, %c0_21, %c0_22], %47 {strides = array<i32>} : memref<8x2x32xbf16, #tpu.memory_space<vmem>>, vector<1x2x32xbf16>,
    %c1_i32 = arith.constant 1 : i32
    %48 = arith.index_cast %c1_i32 : i32 to index
    %c0_23 = arith.constant 0 : index
    %c0_24 = arith.constant 0 : index
    %49 = vector.load %arg7[%48, %c0_23, %c0_24] : memref<8x2x96xf32, #tpu.memory_space<vmem>>, vector<1x2x96xf32>
    %50 = vector.shape_cast %49 : vector<1x2x96xf32> to vector<2x96xf32>
    %51 = vector.extract_strided_slice %50 {offsets = [0, 0], sizes = [2, 32], strides = [1, 1]} : vector<2x96xf32> to vector<2x32xf32>
    %52 = vector.extract_strided_slice %50 {offsets = [0, 32], sizes = [2, 32], strides = [1, 1]} : vector<2x96xf32> to vector<2x32xf32>
    %53 = arith.negf %52 : vector<2x32xf32>
    %54 = math.exp %53 : vector<2x32xf32>
    %cst_25 = arith.constant 1.000000e+00 : f32
    %55 = vector.broadcast %cst_25 : f32 to vector<2x32xf32>
    %56 = arith.addf %55, %54 : vector<2x32xf32>
    %57 = arith.divf %55, %56 : vector<2x32xf32>
    %58 = vector.extract_strided_slice %50 {offsets = [0, 64], sizes = [2, 32], strides = [1, 1]} : vector<2x96xf32> to vector<2x32xf32>
    %59 = arith.negf %58 : vector<2x32xf32>
    %60 = math.exp %59 : vector<2x32xf32>
    %cst_26 = arith.constant 1.000000e+00 : f32
    %61 = vector.broadcast %cst_26 : f32 to vector<2x32xf32>
    %62 = arith.addf %61, %60 : vector<2x32xf32>
    %63 = arith.divf %61, %62 : vector<2x32xf32>
    %64 = arith.mulf %57, %33 : vector<2x32xf32>
    %cst_27 = arith.constant 1.000000e+00 : f32
    %65 = vector.broadcast %cst_27 : f32 to vector<2x32xf32>
    %66 = arith.subf %65, %57 : vector<2x32xf32>
    %67 = arith.mulf %66, %51 : vector<2x32xf32>
    %68 = arith.addf %64, %67 : vector<2x32xf32>
    %69 = arith.mulf %63, %68 : vector<2x32xf32>
    %cst_28 = arith.constant 1.000000e+00 : f32
    %70 = vector.broadcast %cst_28 : f32 to vector<2x32xf32>
    %71 = arith.subf %70, %63 : vector<2x32xf32>
    %72 = arith.index_cast %c1_i32 : i32 to index
    %c0_29 = arith.constant 0 : index
    %c0_30 = arith.constant 0 : index
    %73 = vector.load %arg2[%72, %c0_29, %c0_30] : memref<8x2x32xbf16, #tpu.memory_space<vmem>>, vector<1x2x32xbf16>
    %74 = vector.shape_cast %73 : vector<1x2x32xbf16> to vector<2x32xbf16>
    %75 = arith.extf %74 : vector<2x32xbf16> to vector<2x32xf32>
    %76 = arith.mulf %71, %75 : vector<2x32xf32>
    %77 = arith.addf %69, %76 : vector<2x32xf32>
    %78 = arith.truncf %77 : vector<2x32xf32> to vector<2x32xbf16>
    %79 = arith.index_cast %c1_i32 : i32 to index
    %c0_31 = arith.constant 0 : index
    %c0_32 = arith.constant 0 : index
    %80 = vector.load %arg5[%79, %c0_31, %c0_32] : memref<8x2x32xbf16, #tpu.memory_space<vmem>>, vector<1x2x32xbf16>
    %81 = vector.shape_cast %80 : vector<1x2x32xbf16> to vector<2x32xbf16>
    %82 = vector.shape_cast %78 : vector<2x32xbf16> to vector<1x2x32xbf16>
    tpu.vector_store %arg5[%79, %c0_31, %c0_32], %82 {strides = array<i32>} : memref<8x2x32xbf16, #tpu.memory_space<vmem>>, vector<1x2x32xbf16>,
    %c2_i32 = arith.constant 2 : i32
    %83 = arith.index_cast %c2_i32 : i32 to index
    %c0_33 = arith.constant 0 : index
    %c0_34 = arith.constant 0 : index
    %84 = vector.load %arg7[%83, %c0_33, %c0_34] : memref<8x2x96xf32, #tpu.memory_space<vmem>>, vector<1x2x96xf32>
    %85 = vector.shape_cast %84 : vector<1x2x96xf32> to vector<2x96xf32>
    %86 = vector.extract_strided_slice %85 {offsets = [0, 0], sizes = [2, 32], strides = [1, 1]} : vector<2x96xf32> to vector<2x32xf32>
    %87 = vector.extract_strided_slice %85 {offsets = [0, 32], sizes = [2, 32], strides = [1, 1]} : vector<2x96xf32> to vector<2x32xf32>
    %88 = arith.negf %87 : vector<2x32xf32>
    %89 = math.exp %88 : vector<2x32xf32>
    %cst_35 = arith.constant 1.000000e+00 : f32
    %90 = vector.broadcast %cst_35 : f32 to vector<2x32xf32>
    %91 = arith.addf %90, %89 : vector<2x32xf32>
    %92 = arith.divf %90, %91 : vector<2x32xf32>
    %93 = vector.extract_strided_slice %85 {offsets = [0, 64], sizes = [2, 32], strides = [1, 1]} : vector<2x96xf32> to vector<2x32xf32>
    %94 = arith.negf %93 : vector<2x32xf32>
    %95 = math.exp %94 : vector<2x32xf32>
    %cst_36 = arith.constant 1.000000e+00 : f32
    %96 = vector.broadcast %cst_36 : f32 to vector<2x32xf32>
    %97 = arith.addf %96, %95 : vector<2x32xf32>
    %98 = arith.divf %96, %97 : vector<2x32xf32>
    %99 = arith.mulf %92, %68 : vector<2x32xf32>
    %cst_37 = arith.constant 1.000000e+00 : f32
    %100 = vector.broadcast %cst_37 : f32 to vector<2x32xf32>
    %101 = arith.subf %100, %92 : vector<2x32xf32>
    %102 = arith.mulf %101, %86 : vector<2x32xf32>
    %103 = arith.addf %99, %102 : vector<2x32xf32>
    %104 = arith.mulf %98, %103 : vector<2x32xf32>
    %cst_38 = arith.constant 1.000000e+00 : f32
    %105 = vector.broadcast %cst_38 : f32 to vector<2x32xf32>
    %106 = arith.subf %105, %98 : vector<2x32xf32>
    %107 = arith.index_cast %c2_i32 : i32 to index
    %c0_39 = arith.constant 0 : index
    %c0_40 = arith.constant 0 : index
    %108 = vector.load %arg2[%107, %c0_39, %c0_40] : memref<8x2x32xbf16, #tpu.memory_space<vmem>>, vector<1x2x32xbf16>
    %109 = vector.shape_cast %108 : vector<1x2x32xbf16> to vector<2x32xbf16>
    %110 = arith.extf %109 : vector<2x32xbf16> to vector<2x32xf32>
    %111 = arith.mulf %106, %110 : vector<2x32xf32>
    %112 = arith.addf %104, %111 : vector<2x32xf32>
    %113 = arith.truncf %112 : vector<2x32xf32> to vector<2x32xbf16>
    %114 = arith.index_cast %c2_i32 : i32 to index
    %c0_41 = arith.constant 0 : index
    %c0_42 = arith.constant 0 : index
    %115 = vector.load %arg5[%114, %c0_41, %c0_42] : memref<8x2x32xbf16, #tpu.memory_space<vmem>>, vector<1x2x32xbf16>
    %116 = vector.shape_cast %115 : vector<1x2x32xbf16> to vector<2x32xbf16>
    %117 = vector.shape_cast %113 : vector<2x32xbf16> to vector<1x2x32xbf16>
    tpu.vector_store %arg5[%114, %c0_41, %c0_42], %117 {strides = array<i32>} : memref<8x2x32xbf16, #tpu.memory_space<vmem>>, vector<1x2x32xbf16>,
    %c3_i32 = arith.constant 3 : i32
    %118 = arith.index_cast %c3_i32 : i32 to index
    %c0_43 = arith.constant 0 : index
    %c0_44 = arith.constant 0 : index
    %119 = vector.load %arg7[%118, %c0_43, %c0_44] : memref<8x2x96xf32, #tpu.memory_space<vmem>>, vector<1x2x96xf32>
    %120 = vector.shape_cast %119 : vector<1x2x96xf32> to vector<2x96xf32>
    %121 = vector.extract_strided_slice %120 {offsets = [0, 0], sizes = [2, 32], strides = [1, 1]} : vector<2x96xf32> to vector<2x32xf32>
    %122 = vector.extract_strided_slice %120 {offsets = [0, 32], sizes = [2, 32], strides = [1, 1]} : vector<2x96xf32> to vector<2x32xf32>
    %123 = arith.negf %122 : vector<2x32xf32>
    %124 = math.exp %123 : vector<2x32xf32>
    %cst_45 = arith.constant 1.000000e+00 : f32
    %125 = vector.broadcast %cst_45 : f32 to vector<2x32xf32>
    %126 = arith.addf %125, %124 : vector<2x32xf32>
    %127 = arith.divf %125, %126 : vector<2x32xf32>
    %128 = vector.extract_strided_slice %120 {offsets = [0, 64], sizes = [2, 32], strides = [1, 1]} : vector<2x96xf32> to vector<2x32xf32>
    %129 = arith.negf %128 : vector<2x32xf32>
    %130 = math.exp %129 : vector<2x32xf32>
    %cst_46 = arith.constant 1.000000e+00 : f32
    %131 = vector.broadcast %cst_46 : f32 to vector<2x32xf32>
    %132 = arith.addf %131, %130 : vector<2x32xf32>
    %133 = arith.divf %131, %132 : vector<2x32xf32>
    %134 = arith.mulf %127, %103 : vector<2x32xf32>
    %cst_47 = arith.constant 1.000000e+00 : f32
    %135 = vector.broadcast %cst_47 : f32 to vector<2x32xf32>
    %136 = arith.subf %135, %127 : vector<2x32xf32>
    %137 = arith.mulf %136, %121 : vector<2x32xf32>
    %138 = arith.addf %134, %137 : vector<2x32xf32>
    %139 = arith.mulf %133, %138 : vector<2x32xf32>
    %cst_48 = arith.constant 1.000000e+00 : f32
    %140 = vector.broadcast %cst_48 : f32 to vector<2x32xf32>
    %141 = arith.subf %140, %133 : vector<2x32xf32>
    %142 = arith.index_cast %c3_i32 : i32 to index
    %c0_49 = arith.constant 0 : index
    %c0_50 = arith.constant 0 : index
    %143 = vector.load %arg2[%142, %c0_49, %c0_50] : memref<8x2x32xbf16, #tpu.memory_space<vmem>>, vector<1x2x32xbf16>
    %144 = vector.shape_cast %143 : vector<1x2x32xbf16> to vector<2x32xbf16>
    %145 = arith.extf %144 : vector<2x32xbf16> to vector<2x32xf32>
    %146 = arith.mulf %141, %145 : vector<2x32xf32>
    %147 = arith.addf %139, %146 : vector<2x32xf32>
    %148 = arith.truncf %147 : vector<2x32xf32> to vector<2x32xbf16>
    %149 = arith.index_cast %c3_i32 : i32 to index
    %c0_51 = arith.constant 0 : index
    %c0_52 = arith.constant 0 : index
    %150 = vector.load %arg5[%149, %c0_51, %c0_52] : memref<8x2x32xbf16, #tpu.memory_space<vmem>>, vector<1x2x32xbf16>
    %151 = vector.shape_cast %150 : vector<1x2x32xbf16> to vector<2x32xbf16>
    %152 = vector.shape_cast %148 : vector<2x32xbf16> to vector<1x2x32xbf16>
    tpu.vector_store %arg5[%149, %c0_51, %c0_52], %152 {strides = array<i32>} : memref<8x2x32xbf16, #tpu.memory_space<vmem>>, vector<1x2x32xbf16>,
    %c4_i32 = arith.constant 4 : i32
    %153 = arith.index_cast %c4_i32 : i32 to index
    %c0_53 = arith.constant 0 : index
    %c0_54 = arith.constant 0 : index
    %154 = vector.load %arg7[%153, %c0_53, %c0_54] : memref<8x2x96xf32, #tpu.memory_space<vmem>>, vector<1x2x96xf32>
    %155 = vector.shape_cast %154 : vector<1x2x96xf32> to vector<2x96xf32>
    %156 = vector.extract_strided_slice %155 {offsets = [0, 0], sizes = [2, 32], strides = [1, 1]} : vector<2x96xf32> to vector<2x32xf32>
    %157 = vector.extract_strided_slice %155 {offsets = [0, 32], sizes = [2, 32], strides = [1, 1]} : vector<2x96xf32> to vector<2x32xf32>
    %158 = arith.negf %157 : vector<2x32xf32>
    %159 = math.exp %158 : vector<2x32xf32>
    %cst_55 = arith.constant 1.000000e+00 : f32
    %160 = vector.broadcast %cst_55 : f32 to vector<2x32xf32>
    %161 = arith.addf %160, %159 : vector<2x32xf32>
    %162 = arith.divf %160, %161 : vector<2x32xf32>
    %163 = vector.extract_strided_slice %155 {offsets = [0, 64], sizes = [2, 32], strides = [1, 1]} : vector<2x96xf32> to vector<2x32xf32>
    %164 = arith.negf %163 : vector<2x32xf32>
    %165 = math.exp %164 : vector<2x32xf32>
    %cst_56 = arith.constant 1.000000e+00 : f32
    %166 = vector.broadcast %cst_56 : f32 to vector<2x32xf32>
    %167 = arith.addf %166, %165 : vector<2x32xf32>
    %168 = arith.divf %166, %167 : vector<2x32xf32>
    %169 = arith.mulf %162, %138 : vector<2x32xf32>
    %cst_57 = arith.constant 1.000000e+00 : f32
    %170 = vector.broadcast %cst_57 : f32 to vector<2x32xf32>
    %171 = arith.subf %170, %162 : vector<2x32xf32>
    %172 = arith.mulf %171, %156 : vector<2x32xf32>
    %173 = arith.addf %169, %172 : vector<2x32xf32>
    %174 = arith.mulf %168, %173 : vector<2x32xf32>
    %cst_58 = arith.constant 1.000000e+00 : f32
    %175 = vector.broadcast %cst_58 : f32 to vector<2x32xf32>
    %176 = arith.subf %175, %168 : vector<2x32xf32>
    %177 = arith.index_cast %c4_i32 : i32 to index
    %c0_59 = arith.constant 0 : index
    %c0_60 = arith.constant 0 : index
    %178 = vector.load %arg2[%177, %c0_59, %c0_60] : memref<8x2x32xbf16, #tpu.memory_space<vmem>>, vector<1x2x32xbf16>
    %179 = vector.shape_cast %178 : vector<1x2x32xbf16> to vector<2x32xbf16>
    %180 = arith.extf %179 : vector<2x32xbf16> to vector<2x32xf32>
    %181 = arith.mulf %176, %180 : vector<2x32xf32>
    %182 = arith.addf %174, %181 : vector<2x32xf32>
    %183 = arith.truncf %182 : vector<2x32xf32> to vector<2x32xbf16>
    %184 = arith.index_cast %c4_i32 : i32 to index
    %c0_61 = arith.constant 0 : index
    %c0_62 = arith.constant 0 : index
    %185 = vector.load %arg5[%184, %c0_61, %c0_62] : memref<8x2x32xbf16, #tpu.memory_space<vmem>>, vector<1x2x32xbf16>
    %186 = vector.shape_cast %185 : vector<1x2x32xbf16> to vector<2x32xbf16>
    %187 = vector.shape_cast %183 : vector<2x32xbf16> to vector<1x2x32xbf16>
    tpu.vector_store %arg5[%184, %c0_61, %c0_62], %187 {strides = array<i32>} : memref<8x2x32xbf16, #tpu.memory_space<vmem>>, vector<1x2x32xbf16>,
    %c5_i32 = arith.constant 5 : i32
    %188 = arith.index_cast %c5_i32 : i32 to index
    %c0_63 = arith.constant 0 : index
    %c0_64 = arith.constant 0 : index
    %189 = vector.load %arg7[%188, %c0_63, %c0_64] : memref<8x2x96xf32, #tpu.memory_space<vmem>>, vector<1x2x96xf32>
    %190 = vector.shape_cast %189 : vector<1x2x96xf32> to vector<2x96xf32>
    %191 = vector.extract_strided_slice %190 {offsets = [0, 0], sizes = [2, 32], strides = [1, 1]} : vector<2x96xf32> to vector<2x32xf32>
    %192 = vector.extract_strided_slice %190 {offsets = [0, 32], sizes = [2, 32], strides = [1, 1]} : vector<2x96xf32> to vector<2x32xf32>
    %193 = arith.negf %192 : vector<2x32xf32>
    %194 = math.exp %193 : vector<2x32xf32>
    %cst_65 = arith.constant 1.000000e+00 : f32
    %195 = vector.broadcast %cst_65 : f32 to vector<2x32xf32>
    %196 = arith.addf %195, %194 : vector<2x32xf32>
    %197 = arith.divf %195, %196 : vector<2x32xf32>
    %198 = vector.extract_strided_slice %190 {offsets = [0, 64], sizes = [2, 32], strides = [1, 1]} : vector<2x96xf32> to vector<2x32xf32>
    %199 = arith.negf %198 : vector<2x32xf32>
    %200 = math.exp %199 : vector<2x32xf32>
    %cst_66 = arith.constant 1.000000e+00 : f32
    %201 = vector.broadcast %cst_66 : f32 to vector<2x32xf32>
    %202 = arith.addf %201, %200 : vector<2x32xf32>
    %203 = arith.divf %201, %202 : vector<2x32xf32>
    %204 = arith.mulf %197, %173 : vector<2x32xf32>
    %cst_67 = arith.constant 1.000000e+00 : f32
    %205 = vector.broadcast %cst_67 : f32 to vector<2x32xf32>
    %206 = arith.subf %205, %197 : vector<2x32xf32>
    %207 = arith.mulf %206, %191 : vector<2x32xf32>
    %208 = arith.addf %204, %207 : vector<2x32xf32>
    %209 = arith.mulf %203, %208 : vector<2x32xf32>
    %cst_68 = arith.constant 1.000000e+00 : f32
    %210 = vector.broadcast %cst_68 : f32 to vector<2x32xf32>
    %211 = arith.subf %210, %203 : vector<2x32xf32>
    %212 = arith.index_cast %c5_i32 : i32 to index
    %c0_69 = arith.constant 0 : index
    %c0_70 = arith.constant 0 : index
    %213 = vector.load %arg2[%212, %c0_69, %c0_70] : memref<8x2x32xbf16, #tpu.memory_space<vmem>>, vector<1x2x32xbf16>
    %214 = vector.shape_cast %213 : vector<1x2x32xbf16> to vector<2x32xbf16>
    %215 = arith.extf %214 : vector<2x32xbf16> to vector<2x32xf32>
    %216 = arith.mulf %211, %215 : vector<2x32xf32>
    %217 = arith.addf %209, %216 : vector<2x32xf32>
    %218 = arith.truncf %217 : vector<2x32xf32> to vector<2x32xbf16>
    %219 = arith.index_cast %c5_i32 : i32 to index
    %c0_71 = arith.constant 0 : index
    %c0_72 = arith.constant 0 : index
    %220 = vector.load %arg5[%219, %c0_71, %c0_72] : memref<8x2x32xbf16, #tpu.memory_space<vmem>>, vector<1x2x32xbf16>
    %221 = vector.shape_cast %220 : vector<1x2x32xbf16> to vector<2x32xbf16>
    %222 = vector.shape_cast %218 : vector<2x32xbf16> to vector<1x2x32xbf16>
    tpu.vector_store %arg5[%219, %c0_71, %c0_72], %222 {strides = array<i32>} : memref<8x2x32xbf16, #tpu.memory_space<vmem>>, vector<1x2x32xbf16>,
    %c6_i32 = arith.constant 6 : i32
    %223 = arith.index_cast %c6_i32 : i32 to index
    %c0_73 = arith.constant 0 : index
    %c0_74 = arith.constant 0 : index
    %224 = vector.load %arg7[%223, %c0_73, %c0_74] : memref<8x2x96xf32, #tpu.memory_space<vmem>>, vector<1x2x96xf32>
    %225 = vector.shape_cast %224 : vector<1x2x96xf32> to vector<2x96xf32>
    %226 = vector.extract_strided_slice %225 {offsets = [0, 0], sizes = [2, 32], strides = [1, 1]} : vector<2x96xf32> to vector<2x32xf32>
    %227 = vector.extract_strided_slice %225 {offsets = [0, 32], sizes = [2, 32], strides = [1, 1]} : vector<2x96xf32> to vector<2x32xf32>
    %228 = arith.negf %227 : vector<2x32xf32>
    %229 = math.exp %228 : vector<2x32xf32>
    %cst_75 = arith.constant 1.000000e+00 : f32
    %230 = vector.broadcast %cst_75 : f32 to vector<2x32xf32>
    %231 = arith.addf %230, %229 : vector<2x32xf32>
    %232 = arith.divf %230, %231 : vector<2x32xf32>
    %233 = vector.extract_strided_slice %225 {offsets = [0, 64], sizes = [2, 32], strides = [1, 1]} : vector<2x96xf32> to vector<2x32xf32>
    %234 = arith.negf %233 : vector<2x32xf32>
    %235 = math.exp %234 : vector<2x32xf32>
    %cst_76 = arith.constant 1.000000e+00 : f32
    %236 = vector.broadcast %cst_76 : f32 to vector<2x32xf32>
    %237 = arith.addf %236, %235 : vector<2x32xf32>
    %238 = arith.divf %236, %237 : vector<2x32xf32>
    %239 = arith.mulf %232, %208 : vector<2x32xf32>
    %cst_77 = arith.constant 1.000000e+00 : f32
    %240 = vector.broadcast %cst_77 : f32 to vector<2x32xf32>
    %241 = arith.subf %240, %232 : vector<2x32xf32>
    %242 = arith.mulf %241, %226 : vector<2x32xf32>
    %243 = arith.addf %239, %242 : vector<2x32xf32>
    %244 = arith.mulf %238, %243 : vector<2x32xf32>
    %cst_78 = arith.constant 1.000000e+00 : f32
    %245 = vector.broadcast %cst_78 : f32 to vector<2x32xf32>
    %246 = arith.subf %245, %238 : vector<2x32xf32>
    %247 = arith.index_cast %c6_i32 : i32 to index
    %c0_79 = arith.constant 0 : index
    %c0_80 = arith.constant 0 : index
    %248 = vector.load %arg2[%247, %c0_79, %c0_80] : memref<8x2x32xbf16, #tpu.memory_space<vmem>>, vector<1x2x32xbf16>
    %249 = vector.shape_cast %248 : vector<1x2x32xbf16> to vector<2x32xbf16>
    %250 = arith.extf %249 : vector<2x32xbf16> to vector<2x32xf32>
    %251 = arith.mulf %246, %250 : vector<2x32xf32>
    %252 = arith.addf %244, %251 : vector<2x32xf32>
    %253 = arith.truncf %252 : vector<2x32xf32> to vector<2x32xbf16>
    %254 = arith.index_cast %c6_i32 : i32 to index
    %c0_81 = arith.constant 0 : index
    %c0_82 = arith.constant 0 : index
    %255 = vector.load %arg5[%254, %c0_81, %c0_82] : memref<8x2x32xbf16, #tpu.memory_space<vmem>>, vector<1x2x32xbf16>
    %256 = vector.shape_cast %255 : vector<1x2x32xbf16> to vector<2x32xbf16>
    %257 = vector.shape_cast %253 : vector<2x32xbf16> to vector<1x2x32xbf16>
    tpu.vector_store %arg5[%254, %c0_81, %c0_82], %257 {strides = array<i32>} : memref<8x2x32xbf16, #tpu.memory_space<vmem>>, vector<1x2x32xbf16>,
    %c7_i32 = arith.constant 7 : i32
    %258 = arith.index_cast %c7_i32 : i32 to index
    %c0_83 = arith.constant 0 : index
    %c0_84 = arith.constant 0 : index
    %259 = vector.load %arg7[%258, %c0_83, %c0_84] : memref<8x2x96xf32, #tpu.memory_space<vmem>>, vector<1x2x96xf32>
    %260 = vector.shape_cast %259 : vector<1x2x96xf32> to vector<2x96xf32>
    %261 = vector.extract_strided_slice %260 {offsets = [0, 0], sizes = [2, 32], strides = [1, 1]} : vector<2x96xf32> to vector<2x32xf32>
    %262 = vector.extract_strided_slice %260 {offsets = [0, 32], sizes = [2, 32], strides = [1, 1]} : vector<2x96xf32> to vector<2x32xf32>
    %263 = arith.negf %262 : vector<2x32xf32>
    %264 = math.exp %263 : vector<2x32xf32>
    %cst_85 = arith.constant 1.000000e+00 : f32
    %265 = vector.broadcast %cst_85 : f32 to vector<2x32xf32>
    %266 = arith.addf %265, %264 : vector<2x32xf32>
    %267 = arith.divf %265, %266 : vector<2x32xf32>
    %268 = vector.extract_strided_slice %260 {offsets = [0, 64], sizes = [2, 32], strides = [1, 1]} : vector<2x96xf32> to vector<2x32xf32>
    %269 = arith.negf %268 : vector<2x32xf32>
    %270 = math.exp %269 : vector<2x32xf32>
    %cst_86 = arith.constant 1.000000e+00 : f32
    %271 = vector.broadcast %cst_86 : f32 to vector<2x32xf32>
    %272 = arith.addf %271, %270 : vector<2x32xf32>
    %273 = arith.divf %271, %272 : vector<2x32xf32>
    %274 = arith.mulf %267, %243 : vector<2x32xf32>
    %cst_87 = arith.constant 1.000000e+00 : f32
    %275 = vector.broadcast %cst_87 : f32 to vector<2x32xf32>
    %276 = arith.subf %275, %267 : vector<2x32xf32>
    %277 = arith.mulf %276, %261 : vector<2x32xf32>
    %278 = arith.addf %274, %277 : vector<2x32xf32>
    %279 = arith.mulf %273, %278 : vector<2x32xf32>
    %cst_88 = arith.constant 1.000000e+00 : f32
    %280 = vector.broadcast %cst_88 : f32 to vector<2x32xf32>
    %281 = arith.subf %280, %273 : vector<2x32xf32>
    %282 = arith.index_cast %c7_i32 : i32 to index
    %c0_89 = arith.constant 0 : index
    %c0_90 = arith.constant 0 : index
    %283 = vector.load %arg2[%282, %c0_89, %c0_90] : memref<8x2x32xbf16, #tpu.memory_space<vmem>>, vector<1x2x32xbf16>
    %284 = vector.shape_cast %283 : vector<1x2x32xbf16> to vector<2x32xbf16>
    %285 = arith.extf %284 : vector<2x32xbf16> to vector<2x32xf32>
    %286 = arith.mulf %281, %285 : vector<2x32xf32>
    %287 = arith.addf %279, %286 : vector<2x32xf32>
    %288 = arith.truncf %287 : vector<2x32xf32> to vector<2x32xbf16>
    %289 = arith.index_cast %c7_i32 : i32 to index
    %c0_91 = arith.constant 0 : index
    %c0_92 = arith.constant 0 : index
    %290 = vector.load %arg5[%289, %c0_91, %c0_92] : memref<8x2x32xbf16, #tpu.memory_space<vmem>>, vector<1x2x32xbf16>
    %291 = vector.shape_cast %290 : vector<1x2x32xbf16> to vector<2x32xbf16>
    %292 = vector.shape_cast %288 : vector<2x32xbf16> to vector<1x2x32xbf16>
    tpu.vector_store %arg5[%289, %c0_91, %c0_92], %292 {strides = array<i32>} : memref<8x2x32xbf16, #tpu.memory_space<vmem>>, vector<1x2x32xbf16>,
    %c8_i32 = arith.constant 8 : i32
    %c0_93 = arith.constant 0 : index
    %c0_94 = arith.constant 0 : index
    %293 = vector.load %arg6[%c0_93, %c0_94] : memref<2x32xf32, #tpu.memory_space<vmem>>, vector<2x32xf32>
    tpu.vector_store %arg6[%c0_93, %c0_94], %278 {strides = array<i32>} : memref<2x32xf32, #tpu.memory_space<vmem>>, vector<2x32xf32>,
    return
  }
  func.func @transform_0(%arg0: i32, %arg1: i32) -> (i32, i32, i32) {
    %c0_i32 = arith.constant 0 : i32
    %c0_i32_0 = arith.constant 0 : i32
    return %arg1, %arg0, %c0_i32 : i32, i32, i32
  }
  func.func @transform_1(%arg0: i32, %arg1: i32) -> (i32, i32) {
    %c0_i32 = arith.constant 0 : i32
    %c0_i32_0 = arith.constant 0 : i32
    %c0_i32_1 = arith.constant 0 : i32
    return %c0_i32, %c0_i32_0 : i32, i32
  }
  func.func @transform_2(%arg0: i32, %arg1: i32) -> (i32, i32) {
    %c0_i32 = arith.constant 0 : i32
    %c0_i32_0 = arith.constant 0 : i32
    %c0_i32_1 = arith.constant 0 : i32
    return %c0_i32, %c0_i32_0 : i32, i32
  }
  func.func @transform_3(%arg0: i32, %arg1: i32) -> (i32, i32, i32) {
    %c0_i32 = arith.constant 0 : i32
    %c0_i32_0 = arith.constant 0 : i32
    return %arg1, %arg0, %c0_i32 : i32, i32, i32
  }
  func.func @transform_4(%arg0: i32, %arg1: i32) -> (i32, i32) {
    %c0_i32 = arith.constant 0 : i32
    %c0_i32_0 = arith.constant 0 : i32
    return %arg0, %c0_i32 : i32, i32
  }
}

</mosaic_0001>

<bundles_post_ra>
// kernel: forward.7
= control target key start
LH: loop header
LB: loop body
LE: loop exit
PB: predicated region body
PF: predicated region fallthrough
CT: control target
= control target key end

     0   :  { %8 = vsyncpa [#allocation5], 0  ;;  %s632_s0 = inlined_call_operand.hbm [shape: bf16[16,32], index: 0, kind: input, shape index: {}]   ;;  %s633_s1 = inlined_call_operand.hbm [shape: bf16[32,384], index: 1, kind: input, shape index: {}]   ;;  %s634_s2 = inlined_call_operand.hbm [shape: f32[1,384], index: 2, kind: input, shape index: {}]   ;;  %s635_s3 = inlined_call_operand.hbm [shape: f32[16,384], index: 3, kind: output, shape index: {}]  }
   0x1   :  { %9 = vsyncpa [#allocation8], 0 }
   0x2   :  { %10 = vsyncpa [#allocation6], 0  ;;  %s512_s12 = smov [#allocation7]   ;;  %s418_s16 = scalar_lea.hbm %s633_s1, 768 }
   0x3   :  { %s28_s13 = sshll.u32 %s512_s12, 4  ;;  %p419_p0 = scmp.ne.s32.totalorder %s633_s1, %s418_s16  ;;  %s29_s13 = int_to_ptr.vmem [resolvable:$true] %s28_s13 }
   0x4   :  { %p422_p1 = scmp.lt.u32.totalorder %s418_s16, %s633_s1 }
   0x6   :  { %p424_p2 = pnand %p422_p1, %p419_p0 }
   0x8   :  { %427 = shalt.err (!%p424_p2)
}
   0x9   :  { %s428_s21 = scalar_lea.vmem %s29_s13, 768  ;;  %p433_p4 = scmp.lt.s32.totalorder %s29_s13, %s29_s13 }
   0xa   :  { %p429_p3 = scmp.ne.s32.totalorder %s29_s13, %s428_s21  ;;  %p434_p5 = scmp.lt.s32.totalorder %s428_s21, %s428_s21 }
   0xc   :  { %p435_p6 = por %p434_p5, %p433_p4 }
   0xe   :  { %p436_p7 = pnand %p435_p6, %p429_p3 }
  0x10   :  { %439 = shalt.err (!%p436_p7)
}
  0x11   :  { %s513_s22 = smov 192   ;;  %s514_s23 = smov 12  }
  0x12   :  { %34 = dma.hbm_to_vmem [thread:$0]  %s633_s1, 768, %s29_s13, [#allocation8], %s513_s22, %s513_s22, %s514_s23  }
  0x13   :  { %s515_s26 = smov [#allocation4]   ;;  %s440_s30 = scalar_lea.hbm %s632_s0, 128 }
  0x14   :  { %s16_s27 = sshll.u32 %s515_s26, 4  ;;  %p441_p8 = scmp.ne.s32.totalorder %s632_s0, %s440_s30  ;;  %s17_s27 = int_to_ptr.vmem [resolvable:$true] %s16_s27 }
  0x15   :  { %p444_p9 = scmp.lt.u32.totalorder %s440_s30, %s632_s0 }
  0x17   :  { %p446_p10 = pnand %p444_p9, %p441_p8 }
  0x19   :  { %449 = shalt.err (!%p446_p10)
}
  0x1a   :  { %s450_s8 = scalar_lea.vmem %s17_s27, 128  ;;  %p455_p12 = scmp.lt.s32.totalorder %s17_s27, %s17_s27 }
  0x1b   :  { %p451_p11 = scmp.ne.s32.totalorder %s17_s27, %s450_s8  ;;  %p456_p13 = scmp.lt.s32.totalorder %s450_s8, %s450_s8 }
  0x1d   :  { %p457_p0 = por %p456_p13, %p455_p12 }
  0x1f   :  { %p458_p1 = pnand %p457_p0, %p451_p11 }
  0x21   :  { %461 = shalt.err (!%p458_p1)
}
  0x22   :  { %s516_s1 = smov 64   ;;  %s517_s9 = smov 4  }
  0x23   :  { %22 = dma.hbm_to_vmem [thread:$0]  %s632_s0, 128, %s17_s27, [#allocation5], %s516_s1, %s516_s1, %s517_s9  }
  0x24   :  { %s518_s12 = smov [#allocation9]   ;;  %s462_s16 = scalar_lea.hbm %s634_s2, 48 }
  0x25   :  { %s41_s13 = sshll.u32 %s518_s12, 4  ;;  %p463_p2 = scmp.ne.s32.totalorder %s634_s2, %s462_s16  ;;  %s42_s13 = int_to_ptr.vmem [resolvable:$true] %s41_s13 }
  0x26   :  { %p466_p3 = scmp.lt.u32.totalorder %s462_s16, %s634_s2 }
  0x28   :  { %p468_p4 = pnand %p466_p3, %p463_p2 }
  0x2a   :  { %471 = shalt.err (!%p468_p4)
}
  0x2b   :  { %s472_s21 = scalar_lea.vmem %s42_s13, 48  ;;  %s476_s0 = scalar_lea.vmem %s42_s13, 64 }
  0x2c   :  { %p473_p5 = scmp.ne.s32.totalorder %s42_s13, %s472_s21  ;;  %p477_p6 = scmp.lt.s32.totalorder %s42_s13, %s42_s13 }
  0x2d   :  { %p478_p7 = scmp.lt.s32.totalorder %s476_s0, %s472_s21 }
  0x2f   :  { %p479_p8 = por %p478_p7, %p477_p6 }
  0x31   :  { %p480_p9 = pnand %p479_p8, %p473_p5 }
  0x33   :  { %483 = shalt.err (!%p480_p9)
}
  0x34   :  { %44 = dma.hbm_to_vmem [thread:$0]  %s634_s2, 48, %s42_s13, [#allocation8]  }
  0x35   :  { %506 = dma.done.wait [#allocation5], 128  }
  0x36   :  { %507 = vsyncadd [#allocation5], 4294967168 }
  0x37   :  { %508 = dma.done.wait [#allocation8], 816  }
  0x38   :  { %509 = vsyncadd [#allocation8], 4294966480  ;;  %vm59_vm0 = vcmask 7168   ;;  %v519_v0 = vmov 0.0   ;;  %vm520_vm1 = vmmov 0   ;;  %v521_v1 = vmov 0  }
  0x39   :  { %62 = vst.msk [vmem:[#allocation3] sm:$0xff] %vm59_vm0, %v519_v0  ;;  %63 = vst.msk [vmem:[#allocation3 + $0x8] sm:$0xff] %vm59_vm0, %v519_v0  ;;  %365 = vmatprep.subr.bf16.mxu1 %v519_v0  ;;  %369 = vmatprep.mubr.msk.bf16.mxu1 %vm520_vm1, %v519_v0  ;;  %v389_v2 = vld [vmem:[#allocation7 + $0x4] ss:$12 sps:$4 sm:$0xff]   ;;  %v391_v3 = vld [vmem:[#allocation7 + $0x8] ss:$12 sps:$4 sm:$0xff]   ;;  %v76_v10 = vlaneseq }
  0x3a   :  { %164 = vmatprep.mubr.bf16.mxu0 %v521_v1  ;;  %387 = vset.pattern.permute.xlu1 %v521_v1  ;;  %v392_v4 = vld [vmem:[#allocation7] ss:$12 sps:$4 sm:$0xff]   ;;  %v393_v5 = vld [vmem:[#allocation7 + $0x1c] ss:$12 sps:$4 sm:$0xff]   ;;  %v396_v7 = vld [vmem:[#allocation7 + $0x18] ss:$12 sps:$4 sm:$0xff]  }
  0x3b   :  { %388 = vset.pattern.permute.xlu0 %v521_v1  ;;  %132 = vmatprep.subr.bf16.mxu0 %v389_v2  ;;  %v395_v6 = vld [vmem:[#allocation7 + $0x20] ss:$12 sps:$4 sm:$0xff]   ;;  %v397_v8 = vld [vmem:[#allocation4] sm:$0xff]   ;;  %vm128_vm2 = vcmask 261120   ;;  %v522_v9 = vmov -inf   ;;  %v77_v11 = vshrl.u32 %v76_v10, 7 }
  0x3c   :  { %366 = vmatpush3.bf16.msra.mxu1 %v391_v3  ;;  %133 = vmatpush1.bf16.msra.mxu0 %v392_v4  ;;  %60 = vst.msk [vmem:[#allocation2] sm:$0xff] %vm59_vm0, %v522_v9  ;;  %61 = vst.msk [vmem:[#allocation2 + $0x8] sm:$0xff] %vm59_vm0, %v522_v9  ;;  %v74_v13 = vld [vmem:[#allocation9] sm:$0x7]  ;;  %s523_s2 = smov [#allocation10]  }
  0x3d   :  { %367 = vmatprep.subr.bf16.mxu1 %v519_v0  ;;  %134 = vmatprep.subr.bf16.mxu0 %v393_v5  ;;  %v86_v12 = vsub.s32 2, %v77_v11  ;;  %v78_v14 = vsub.s32 0, %v77_v11  ;;  %v82_v15 = vsub.s32 1, %v77_v11  ;;  %s338_s24 = sshll.u32 %s523_s2, 4  ;;  %s339_s24 = int_to_ptr.vmem [resolvable:$true] %s338_s24 }
  0x3e   :  { %s484_s25 = scalar_lea.vmem %s339_s24, 768  ;;  %p489_p11 = scmp.lt.s32.totalorder %s339_s24, %s339_s24 }
  0x3f   :  { %v87_v16 = vrot.slane %v74_v13, %v86_v12  ;;  %v79_v17 = vrot.slane %v74_v13, %v78_v14  ;;  %v83_v18 = vrot.slane %v74_v13, %v82_v15  ;;  %p485_p10 = scmp.ne.s32.totalorder %s339_s24, %s484_s25  ;;  %p490_p12 = scmp.lt.s32.totalorder %s484_s25, %s484_s25 }
  0x40   :  { %368 = vmatpush3.bf16.msra.mxu1 %v395_v6  ;;  %135 = vmatpush1.bf16.msra.mxu0 %v396_v7  ;;  %v240_v12 = vld [vmem:[#allocation3 + $0x8] sm:$0xff] }
  0x41   :  { %p491_p13 = por %p490_p12, %p489_p11 }
  0x43   :  { %370 = vmatmul.mubr.msk.bf16.vlgmr.msra.gmra.mrb[0].mxu1 %vm128_vm2, %v397_v8  ;;  %360 = vmatmul.mubr.msk.bf16.vlgmr.msra.gmra.mrb[0].mxu0 %vm128_vm2, %v397_v8  ;;  %v227_v37 = vld [vmem:[#allocation2] sm:$0xff]  ;;  %v228_v40 = vld [vmem:[#allocation2 + $0x8] sm:$0xff]  ;;  %v239_v8 = vld [vmem:[#allocation3] sm:$0xff]  ;;  %p492_p0 = pnand %p491_p13, %p485_p10 }
 0x116   :  { %v209_v19 = vpop.f32.mrb[0].mxu1  ;;  %v166_v21 = vpop.f32.mrb[0].mxu0 }
 0x117   :  { %v586_v20 = vadd.f32 %v209_v19, %v87_v16  ;;  %v371_v22 = vpop.f32.mrb[1].mxu1  ;;  %v588_v23 = vadd.f32 %v166_v21, %v79_v17  ;;  %v168_v24 = vpop.f32.mrb[1].mxu0 }
 0x118   :  { %v212_v25 = vpop.f32.mrb[2].mxu1  ;;  %v590_v26 = vadd.f32 %v168_v24, %v83_v18  ;;  %v170_v28 = vpop.f32.mrb[2].mxu0 }
 0x119   :  { %v592_v27 = vadd.f32 %v212_v25, %v87_v16  ;;  %v372_v29 = vpop.f32.mrb[3].mxu1  ;;  %v594_v30 = vadd.f32 %v170_v28, %v79_v17  ;;  %v172_v31 = vpop.f32.mrb[3].mxu0  ;;  %v229_v32 = vmax.f32 %v588_v23, %v586_v20 }
 0x11a   :  { %v598_v33 = vadd.f32 %v172_v31, %v83_v18 }
 0x11b   :  { %v230_v34 = vmax.f32 %v229_v32, %v590_v26  ;;  %v233_v35 = vmax.f32 %v594_v30, %v592_v27 }
 0x11d   :  { %231 = vmax.xlane.f32.xlu0 %v230_v34  ;;  %v234_v36 = vmax.f32 %v233_v35, %v598_v33 }
 0x121   :  { %235 = vmax.xlane.f32.xlu0 %v234_v36 }
 0x1aa   :  { %v232_v38 = vpop.xlane.xlu0 %231 }
 0x1ab   :  { %v237_v39 = vmax.f32 %v227_v37, %v232_v38 }
 0x1ad   :  { %v241_v41 = vsub.f32 %v227_v37, %v237_v39  ;;  %290 = vst.msk [vmem:[#allocation2] sm:$0xff] %vm59_vm0, %v237_v39  ;;  %251 = vperm.xlu1 %387, %v237_v39  }
 0x1ae   :  { %v236_v42 = vpop.xlane.xlu0 %235 }
 0x1af   :  { %v238_v43 = vmax.f32 %v228_v40, %v236_v42  ;;  %v243_v5 = vmul.f32 1.442695, %v241_v41 }
 0x1b1   :  { %v242_v44 = vsub.f32 %v228_v40, %v238_v43  ;;  %291 = vst.msk [vmem:[#allocation2 + $0x8] sm:$0xff] %vm59_vm0, %v238_v43  ;;  %256 = vperm.xlu1 %387, %v238_v43  }
 0x1b3   :  { %v245_v6 = vmul.f32 1.442695, %v242_v44 }
 0x1b4   :  { %v295_v22 = vld [vmem:[#allocation2] sm:$0xff] }
 0x1b8   :  { %v296_v29 = vld [vmem:[#allocation2 + $0x8] sm:$0xff] }
 0x22c   :  { %v252_v45 = vpop.permute.xlu1 %251 }
 0x22d   :  { %v259_v46 = vsub.f32 %v588_v23, %v252_v45  ;;  %v260_v47 = vsub.f32 %v590_v26, %v252_v45  ;;  %v261_v48 = vsub.f32 %v586_v20, %v252_v45 }
 0x22f   :  { %v265_v49 = vmul.f32 1.442695, %v259_v46  ;;  %v267_v50 = vmul.f32 1.442695, %v260_v47  ;;  %v269_v51 = vmul.f32 1.442695, %v261_v48 }
 0x230   :  { %v257_v52 = vpop.permute.xlu1 %256 }
 0x231   :  { %398 = vpow2.f32 %v265_v49  ;;  %v262_v53 = vsub.f32 %v594_v30, %v257_v52  ;;  %v263_v54 = vsub.f32 %v598_v33, %v257_v52  ;;  %v264_v55 = vsub.f32 %v592_v27, %v257_v52 }
 0x232   :  { %400 = vpow2.f32 %v267_v50 }
 0x233   :  { %v271_v56 = vmul.f32 1.442695, %v262_v53  ;;  %v273_v57 = vmul.f32 1.442695, %v263_v54  ;;  %402 = vpow2.f32 %v269_v51  ;;  %v275_v58 = vmul.f32 1.442695, %v264_v55 }
 0x235   :  { %404 = vpow2.f32 %v271_v56 }
 0x236   :  { %406 = vpow2.f32 %v273_v57 }
 0x237   :  { %408 = vpow2.f32 %v275_v58 }
 0x238   :  { %410 = vpow2.f32 %v243_v5 }
 0x239   :  { %412 = vpow2.f32 %v245_v6 }
 0x23b   :  { %v399_v59 = vpop.eup %398 }
 0x23c   :  { %v401_v60 = vpop.eup %400 }
 0x23d   :  { %v277_v61 = vadd.f32 %v401_v60, %v399_v59  ;;  %v403_v62 = vpop.eup %402 }
 0x23f   :  { %v405_v63 = vpop.eup %404  ;;  %v278_v0 = vadd.f32 %v403_v62, %v277_v61 }
 0x240   :  { %v407_v1 = vpop.eup %406 }
 0x241   :  { %279 = vadd.xlane.f32.xlu0 %v278_v0  ;;  %v281_v2 = vadd.f32 %v407_v1, %v405_v63  ;;  %v409_v3 = vpop.eup %408 }
 0x242   :  { %v411_v7 = vpop.eup %410 }
 0x243   :  { %v282_v4 = vadd.f32 %v409_v3, %v281_v2  ;;  %v247_v9 = vmul.f32 %v411_v7, %v239_v8  ;;  %v413_v10 = vpop.eup %412 }
 0x244   :  { %v248_v14 = vmul.f32 %v413_v10, %v240_v12 }
 0x245   :  { %283 = vadd.xlane.f32.xlu1 %v282_v4 }
 0x2ce   :  { %v280_v11 = vpop.xlane.xlu0 %279 }
 0x2cf   :  { %v285_v13 = vadd.f32 %v280_v11, %v247_v9 }
 0x2d1   :  { %288 = vst.msk [vmem:[#allocation3] sm:$0xff] %vm59_vm0, %v285_v13 }
 0x2d2   :  { %v284_v15 = vpop.xlane.xlu1 %283 }
 0x2d3   :  { %v286_v16 = vadd.f32 %v284_v15, %v248_v14 }
 0x2d5   :  { %289 = vst.msk [vmem:[#allocation3 + $0x8] sm:$0xff] %vm59_vm0, %v286_v16 }
 0x2d8   :  { %v297_v17 = vld [vmem:[#allocation3] sm:$0xff] }
 0x2d9   :  { %414 = vlog2.f32 %v297_v17 }
 0x2dc   :  { %v298_v18 = vld [vmem:[#allocation3 + $0x8] sm:$0xff] }
 0x2dd   :  { %416 = vlog2.f32 %v298_v18 }
 0x2e3   :  { %v415_v19 = vpop.eup %414 }
 0x2e4   :  { %v300_v21 = vmul.f32 0.6931472, %v415_v19 }
 0x2e6   :  { %v303_v24 = vadd.f32 %v300_v21, %v295_v22 }
 0x2e7   :  { %v417_v25 = vpop.eup %416 }
 0x2e8   :  { %313 = vperm.xlu0 %388, %v303_v24   ;;  %v302_v28 = vmul.f32 0.6931472, %v417_v25 }
 0x2ea   :  { %v304_v31 = vadd.f32 %v302_v28, %v296_v29 }
 0x2ec   :  { %318 = vperm.xlu1 %387, %v304_v31  }
 0x367   :  { %v314_v32 = vpop.permute.xlu0 %313 }
 0x368   :  { %v321_v34 = vsub.f32 %v588_v23, %v314_v32  ;;  %v322_v35 = vsub.f32 %v590_v26, %v314_v32  ;;  %v323_v36 = vsub.f32 %v586_v20, %v314_v32 }
 0x36a   :  { %327 = vst [vmem:[#allocation10] sm:$0xff] %v321_v34  ;;  %328 = vst [vmem:[#allocation10 + $0x8] sm:$0xff] %v322_v35 }
 0x36b   :  { %329 = vst [vmem:[#allocation10 + $0x10] sm:$0xff] %v323_v36  ;;  %v319_v37 = vpop.permute.xlu1 %318 }
 0x36c   :  { %v324_v38 = vsub.f32 %v594_v30, %v319_v37  ;;  %v325_v39 = vsub.f32 %v598_v33, %v319_v37  ;;  %v326_v40 = vsub.f32 %v592_v27, %v319_v37 }
 0x36e   :  { %330 = vst [vmem:[#allocation10 + $0x18] sm:$0xff] %v324_v38  ;;  %331 = vst [vmem:[#allocation10 + $0x20] sm:$0xff] %v325_v39 }
 0x36f   :  { %332 = vst [vmem:[#allocation10 + $0x28] sm:$0xff] %v326_v40 }
 0x370   :  { %495 = shalt.err (!%p492_p0)
}
 0x371   :  { %s496_s28 = scalar_lea.hbm %s635_s3, 768 }
 0x372   :  { %p497_p1 = scmp.ne.s32.totalorder %s635_s3, %s496_s28  ;;  %p500_p2 = scmp.lt.u32.totalorder %s496_s28, %s635_s3 }
 0x374   :  { %p502_p3 = pnand %p500_p2, %p497_p1 }
 0x376   :  { %505 = shalt.err (!%p502_p3)
}
 0x377   :  { %s524_s6 = smov 384   ;;  %s525_s7 = smov 24  }
 0x378   :  { %344 = dma.vmem_to_hbm [thread:$0]  %s339_s24, 768, %s635_s3, [#allocation6], %s524_s6, %s524_s6, %s525_s7  }
 0x379   :  { %510 = dma.done.wait [#allocation6], 768  }
 0x37a   :  { %511 = vsyncadd [#allocation6], 4294966528 }
 0x37b   :  { %348 = vsyncpa [#allocation5], 1 }
 0x37c   :  { %349 = vsyncpa [#allocation8], 1 }
 0x37d   :  { %350 = vsyncpa [#allocation6], 1 }

// kernel: forward.4
= control target key start
LH: loop header
LB: loop body
LE: loop exit
PB: predicated region body
PF: predicated region fallthrough
CT: control target
= control target key end

     0   :  { %10 = vsyncpa [#allocation4], 0  ;;  %s1233_s0 = inlined_call_operand.hbm [shape: bf16[8,2,32], index: 0, kind: input, shape index: {}]   ;;  %s1234_s1 = inlined_call_operand.hbm [shape: bf16[32,96], index: 1, kind: input, shape index: {}]   ;;  %s1235_s2 = inlined_call_operand.hbm [shape: f32[1,96], index: 2, kind: input, shape index: {}]   ;;  %s1236_s3 = inlined_call_operand.hbm [shape: bf16[8,2,32], index: 3, kind: output, shape index: {0}]   ;;  %s1237_s4 = inlined_call_operand.hbm [shape: f32[2,32], index: 4, kind: output, shape index: {1}]  }
   0x1   :  { %11 = vsyncpa [#allocation7], 0 }
   0x2   :  { %12 = vsyncpa [#allocation5], 0 }
   0x3   :  { %13 = vsyncpa [#allocation11], 0  ;;  %s964_s15 = smov [#allocation6]   ;;  %s846_s19 = scalar_lea.hbm %s1234_s1, 256 }
   0x4   :  { %s31_s16 = sshll.u32 %s964_s15, 4  ;;  %p847_p0 = scmp.ne.s32.totalorder %s1234_s1, %s846_s19  ;;  %s32_s16 = int_to_ptr.vmem [resolvable:$true] %s31_s16 }
   0x5   :  { %p850_p1 = scmp.lt.u32.totalorder %s846_s19, %s1234_s1 }
   0x7   :  { %p852_p2 = pnand %p850_p1, %p847_p0 }
   0x9   :  { %855 = shalt.err (!%p852_p2)
}
   0xa   :  { %s856_s24 = scalar_lea.vmem %s32_s16, 256  ;;  %p861_p4 = scmp.lt.s32.totalorder %s32_s16, %s32_s16 }
   0xb   :  { %p857_p3 = scmp.ne.s32.totalorder %s32_s16, %s856_s24  ;;  %p862_p5 = scmp.lt.s32.totalorder %s856_s24, %s856_s24 }
   0xd   :  { %p863_p6 = por %p862_p5, %p861_p4 }
   0xf   :  { %p864_p7 = pnand %p863_p6, %p857_p3 }
  0x11   :  { %867 = shalt.err (!%p864_p7)
}
  0x12   :  { %s965_s25 = smov 64   ;;  %s966_s26 = smov 4  }
  0x13   :  { %37 = dma.hbm_to_vmem [thread:$0]  %s1234_s1, 256, %s32_s16, [#allocation7], %s965_s25, %s965_s25, %s966_s26  }
  0x14   :  { %s967_s29 = smov [#allocation3]   ;;  %s868_s7 = scalar_lea.hbm %s1233_s0, 128 }
  0x15   :  { %s19_s30 = sshll.u32 %s967_s29, 4  ;;  %p869_p8 = scmp.ne.s32.totalorder %s1233_s0, %s868_s7  ;;  %s20_s30 = int_to_ptr.vmem [resolvable:$true] %s19_s30 }
  0x16   :  { %p872_p9 = scmp.lt.u32.totalorder %s868_s7, %s1233_s0 }
  0x18   :  { %p874_p10 = pnand %p872_p9, %p869_p8 }
  0x1a   :  { %877 = shalt.err (!%p874_p10)
}
  0x1b   :  { %s878_s12 = scalar_lea.vmem %s20_s30, 128  ;;  %p883_p12 = scmp.lt.s32.totalorder %s20_s30, %s20_s30 }
  0x1c   :  { %p879_p11 = scmp.ne.s32.totalorder %s20_s30, %s878_s12  ;;  %p884_p13 = scmp.lt.s32.totalorder %s878_s12, %s878_s12 }
  0x1e   :  { %p885_p0 = por %p884_p13, %p883_p12 }
  0x20   :  { %p886_p1 = pnand %p885_p0, %p879_p11 }
  0x22   :  { %889 = shalt.err (!%p886_p1)
}
  0x23   :  { %s968_s1 = smov 16   ;;  %s969_s13 = smov 1  }
  0x24   :  { %25 = dma.hbm_to_vmem [thread:$0]  %s1233_s0, 128, %s20_s30, [#allocation4], %s968_s1, %s968_s1, %s969_s13  }
  0x25   :  { %s970_s16 = smov [#allocation8]   ;;  %s890_s20 = scalar_lea.hbm %s1235_s2, 16 }
  0x26   :  { %s44_s17 = sshll.u32 %s970_s16, 4  ;;  %p891_p2 = scmp.ne.s32.totalorder %s1235_s2, %s890_s20  ;;  %s45_s17 = int_to_ptr.vmem [resolvable:$true] %s44_s17 }
  0x27   :  { %p894_p3 = scmp.lt.u32.totalorder %s890_s20, %s1235_s2 }
  0x29   :  { %p896_p4 = pnand %p894_p3, %p891_p2 }
  0x2b   :  { %899 = shalt.err (!%p896_p4)
}
  0x2c   :  { %s900_s26 = scalar_lea.vmem %s45_s17, 16  ;;  %s904_s0 = scalar_lea.vmem %s45_s17, 32 }
  0x2d   :  { %p901_p5 = scmp.ne.s32.totalorder %s45_s17, %s900_s26  ;;  %p905_p6 = scmp.lt.s32.totalorder %s45_s17, %s45_s17 }
  0x2e   :  { %p906_p7 = scmp.lt.s32.totalorder %s904_s0, %s900_s26 }
  0x30   :  { %p907_p8 = por %p906_p7, %p905_p6 }
  0x32   :  { %p908_p9 = pnand %p907_p8, %p901_p5 }
  0x34   :  { %911 = shalt.err (!%p908_p9)
}
  0x35   :  { %47 = dma.hbm_to_vmem [thread:$0]  %s1235_s2, 16, %s45_s17, [#allocation7]  }
  0x36   :  { %956 = dma.done.wait [#allocation4], 128  }
  0x37   :  { %957 = vsyncadd [#allocation4], 4294967168 }
  0x38   :  { %958 = dma.done.wait [#allocation7], 272  }
  0x39   :  { %959 = vsyncadd [#allocation7], 4294967024  ;;  %vm62_vm0 = vcmask 254976   ;;  %v98_v0 = vlaneseq  ;;  %v971_v1 = vmov 0.0   ;;  %vm972_vm1 = vmmov 0   ;;  %v812_v6 = vld [vmem:[#allocation6] sm:$0xff]  }
  0x3a   :  { %63 = vst.msk [vmem:[#allocation10] sm:$0x3] %vm62_vm0, %v971_v1  ;;  %769 = vmatprep.subr.bf16.mxu0 %v971_v1  ;;  %773 = vmatprep.mubr.msk.bf16.mxu0 %vm972_vm1, %v971_v1  ;;  %v973_v2 = vmov 1966171168   ;;  %v813_v7 = vld [vmem:[#allocation6 + $0x8] sm:$0xff]   ;;  %s974_s2 = smov 32  }
  0x3b   :  { %v96_v3 = vunpack.c.l.s4 %v973_v2  ;;  %v99_v5 = vshrl.u32 %v98_v0, 7  ;;  %770 = vmatpush3.bf16.msra.mxu0 %v812_v6  ;;  %v64_v9 = vld [vmem:[#allocation3] sm:$0x1]  ;;  %v65_v10 = vld [vmem:[#allocation3 + $0x1] sm:$0x1]  ;;  %vm152_vm2 = vcmask 261120  }
  0x3c   :  { %v66_v11 = vld [vmem:[#allocation3 + $0x2] sm:$0x1]  ;;  %771 = vmatprep.subr.bf16.mxu0 %v971_v1  ;;  %v67_v12 = vld [vmem:[#allocation3 + $0x3] sm:$0x1]  ;;  %v68_v13 = vld [vmem:[#allocation3 + $0x4] sm:$0x1]  ;;  %v91_v15 = vcombine.low %v64_v9, %v65_v10 }
  0x3d   :  { %v97_v4 = vunpack.c.0.s8 %v96_v3  ;;  %v69_v14 = vld [vmem:[#allocation3 + $0x5] sm:$0x1]  ;;  %v70_v16 = vld [vmem:[#allocation3 + $0x6] sm:$0x1]  ;;  %v71_v17 = vld [vmem:[#allocation3 + $0x7] sm:$0x1]  ;;  %v92_v18 = vcombine.low %v66_v11, %v67_v12 }
  0x3e   :  { %v93_v19 = vcombine.low %v68_v13, %v69_v14  ;;  %v94_v21 = vcombine.low %v70_v16, %v71_v17  ;;  %v975_v31 = vmov 1983009808   ;;  %v754_v34 = vld [vmem:[#allocation8] ss:$0 sm:$0xff]  ;;  %vm241_vm3 = vcmask 779264   ;;  %s976_s29 = smov 96  }
  0x3f   :  { %v1046_v8 = vsub.s32 %v97_v4, %v99_v5  ;;  %772 = vmatpush3.bf16.msra.mxu0 %v813_v7  ;;  %v201_v32 = vunpack.c.l.s4 %v975_v31  ;;  %v275_v54 = vld [vmem:[#allocation3] sm:$0x1]  ;;  %v333_v55 = vld [vmem:[#allocation3 + $0x1] sm:$0x1]  ;;  %v391_v57 = vld [vmem:[#allocation3 + $0x2] sm:$0x1] }
  0x40   :  { %v449_v58 = vld [vmem:[#allocation3 + $0x3] sm:$0x1]  ;;  %v276_v59 = vunpack.c.l.bf16 %v275_v54  ;;  %v334_v60 = vunpack.c.l.bf16 %v333_v55  ;;  %v507_v62 = vld [vmem:[#allocation3 + $0x4] sm:$0x1]  ;;  %v565_v63 = vld [vmem:[#allocation3 + $0x5] sm:$0x1]  ;;  %v392_v0 = vunpack.c.l.bf16 %v391_v57 }
  0x41   :  { %v250_v20 = vld [vmem:[#allocation10] sm:$0x3]  ;;  %v101_v22 = vrot.slane %v91_v15, %v1046_v8  ;;  %v108_v23 = vrot.slane %v92_v18, %v1046_v8  ;;  %v115_v24 = vrot.slane %v93_v19, %v1046_v8  ;;  %v122_v25 = vrot.slane %v94_v21, %v1046_v8  ;;  %s978_s5 = smov [#allocation10]  }
  0x42   :  { %259 = vrot.lane.b32.xlu0 %v250_v20, %s974_s2  ;;  %v202_v33 = vunpack.c.0.s8 %v201_v32  ;;  %v450_v1 = vunpack.c.l.bf16 %v449_v58  ;;  %v566_v6 = vunpack.c.l.bf16 %v565_v63  ;;  %vm309_vm4 = vcmask 253952   ;;  %s740_s6 = sshll.u32 %s978_s5, 4  ;;  %s741_s6 = int_to_ptr.vmem [resolvable:$true] %s740_s6 }
  0x43   :  { %v123_v26 = vcombine.low %v101_v22, %v108_v23  ;;  %v124_v27 = vcombine.low %v115_v24, %v122_v25 }
  0x44   :  { %v1055_v35 = vsub.s32 %v202_v33, %v99_v5  ;;  %v508_v5 = vunpack.c.l.bf16 %v507_v62 }
  0x45   :  { %v131_v28 = vrot.slane %v123_v26, %v1046_v8  ;;  %v138_v29 = vrot.slane %v124_v27, %v1046_v8 }
  0x46   :  { %v284_v3 = vrot.slane %v276_v59, %v1055_v35  ;;  %v342_v4 = vrot.slane %v334_v60, %v1055_v35  ;;  %v400_v9 = vrot.slane %v392_v0, %v1055_v35  ;;  %v458_v10 = vrot.slane %v450_v1, %v1055_v35 }
  0x47   :  { %v139_v30 = vcombine.low %v131_v28, %v138_v29  ;;  %v516_v13 = vrot.slane %v508_v5, %v1055_v35  ;;  %v574_v14 = vrot.slane %v566_v6, %v1055_v35  ;;  %v623_v5 = vld [vmem:[#allocation3 + $0x6] sm:$0x1]  ;;  %v681_v6 = vld [vmem:[#allocation3 + $0x7] sm:$0x1] }
  0x48   :  { %v792_v12 = vpack.i.bf16 %v342_v4, %v284_v3  ;;  %v797_v16 = vpack.i.bf16 %v458_v10, %v400_v9 }
  0x49   :  { %774 = vmatmul.mubr.msk.bf16.vlgmr.msra.gmra.mrb[0].mxu0 %vm152_vm2, %v139_v30  ;;  %v802_v17 = vpack.i.bf16 %v574_v14, %v516_v13  ;;  %v624_v13 = vunpack.c.l.bf16 %v623_v5  ;;  %v682_v14 = vunpack.c.l.bf16 %v681_v6 }
 0x11c   :  { %v190_v36 = vpop.f32.mrb[0].mxu0 }
 0x11d   :  { %v191_v37 = vadd.f32 %v754_v34, %v190_v36  ;;  %v775_v38 = vpop.f32.mrb[1].mxu0 }
 0x11e   :  { %v193_v39 = vpop.f32.mrb[2].mxu0 }
 0x11f   :  { %v199_v40 = vcombine.high %v191_v37, %v191_v37  ;;  %v206_v41 = vrot.slane %v191_v37, %v1055_v35  ;;  %v194_v42 = vadd.f32 %v754_v34, %v193_v39  ;;  %v776_v43 = vpop.f32.mrb[3].mxu0  ;;  %v260_v37 = vpop.permute.xlu0 %259 }
 0x121   :  { %v213_v44 = vrot.slane %v199_v40, %v1055_v35  ;;  %v214_v45 = vcombine.high %v206_v41, %v206_v41  ;;  %242 = vst.msk [vmem:[#allocation2] sm:$0x3] %vm241_vm3, %v206_v41  ;;  %v216_v46 = vcombine.high %v194_v42, %v194_v42  ;;  %v223_v47 = vrot.slane %v194_v42, %v1055_v35 }
 0x123   :  { %v215_v48 = vcombine.high %v213_v44, %v213_v44  ;;  %243 = vst.msk [vmem:[#allocation2 + $0x2] sm:$0x3] %vm241_vm3, %v214_v45  ;;  %244 = vst.msk [vmem:[#allocation2 + $0x4] sm:$0x3] %vm241_vm3, %v213_v44  ;;  %v230_v49 = vrot.slane %v216_v46, %v1055_v35  ;;  %v231_v50 = vcombine.high %v223_v47, %v223_v47 }
 0x124   :  { %246 = vst.msk [vmem:[#allocation2 + $0x8] sm:$0x3] %vm241_vm3, %v223_v47 }
 0x125   :  { %245 = vst.msk [vmem:[#allocation2 + $0x6] sm:$0x3] %vm241_vm3, %v215_v48  ;;  %v232_v51 = vcombine.high %v230_v49, %v230_v49  ;;  %247 = vst.msk [vmem:[#allocation2 + $0xa] sm:$0x3] %vm241_vm3, %v231_v50 }
 0x126   :  { %248 = vst.msk [vmem:[#allocation2 + $0xc] sm:$0x3] %vm241_vm3, %v230_v49 }
 0x127   :  { %249 = vst.msk [vmem:[#allocation2 + $0xe] sm:$0x3] %vm241_vm3, %v232_v51 }
 0x128   :  { %v251_v52 = vld [vmem:[#allocation2] sm:$0x3] }
 0x129   :  { %265 = vrot.lane.b32.xlu0 %v251_v52, %s974_s2  ;;  %v758_v18 = vmul.f32 -1.442695, %v251_v52 }
 0x12a   :  { %v312_v53 = vld [vmem:[#allocation2 + $0x2] sm:$0x3]  ;;  %v370_v61 = vld [vmem:[#allocation2 + $0x4] sm:$0x3] }
 0x12b   :  { %322 = vrot.lane.b32.xlu1 %v312_v53, %s974_s2  ;;  %v486_v7 = vld [vmem:[#allocation2 + $0x8] sm:$0x3]  ;;  %814 = vpow2.f32 %v758_v18  ;;  %v759_v19 = vmul.f32 -1.442695, %v312_v53  ;;  %v760_v20 = vmul.f32 -1.442695, %v370_v61 }
 0x12c   :  { %v428_v56 = vld [vmem:[#allocation2 + $0x6] sm:$0x3]  ;;  %v544_v2 = vld [vmem:[#allocation2 + $0xa] sm:$0x3]  ;;  %v762_v23 = vmul.f32 -1.442695, %v486_v7 }
 0x12d   :  { %438 = vrot.lane.b32.xlu0 %v428_v56, %s974_s2  ;;  %v602_v15 = vld [vmem:[#allocation2 + $0xc] sm:$0x3]  ;;  %816 = vpow2.f32 %v759_v19  ;;  %v761_v21 = vmul.f32 -1.442695, %v428_v56  ;;  %v763_v26 = vmul.f32 -1.442695, %v544_v2 }
 0x12e   :  { %v660_v11 = vld [vmem:[#allocation2 + $0xe] sm:$0x3]  ;;  %818 = vpow2.f32 %v760_v20  ;;  %v764_v29 = vmul.f32 -1.442695, %v602_v15 }
 0x12f   :  { %380 = vrot.lane.b32.xlu1 %v370_v61, %s974_s2  ;;  %820 = vpow2.f32 %v761_v21  ;;  %v765_v32 = vmul.f32 -1.442695, %v660_v11  ;;  %v632_v21 = vrot.slane %v624_v13, %v1055_v35 }
 0x130   :  { %822 = vpow2.f32 %v762_v23 }
 0x131   :  { %554 = vrot.lane.b32.xlu0 %v544_v2, %s974_s2 }
 0x133   :  { %496 = vrot.lane.b32.xlu1 %v486_v7, %s974_s2 }
 0x135   :  { %670 = vrot.lane.b32.xlu0 %v660_v11, %s974_s2  ;;  %v815_v22 = vpop.eup %814 }
 0x136   :  { %v255_v24 = vadd.f32 1.0, %v815_v22  ;;  %v690_v22 = vrot.slane %v682_v14, %v1055_v35 }
 0x137   :  { %612 = vrot.lane.b32.xlu1 %v602_v15, %s974_s2  ;;  %v817_v25 = vpop.eup %816 }
 0x138   :  { %824 = vrcp.f32 %v255_v24  ;;  %v316_v27 = vadd.f32 1.0, %v817_v25  ;;  %v819_v28 = vpop.eup %818 }
 0x139   :  { %793 = vrot.lane.b32.xlu0 %v792_v12, %s965_s25  ;;  %826 = vpow2.f32 %v763_v26  ;;  %v374_v30 = vadd.f32 1.0, %v819_v28  ;;  %v821_v31 = vpop.eup %820 }
 0x13a   :  { %828 = vrcp.f32 %v316_v27  ;;  %v432_v33 = vadd.f32 1.0, %v821_v31  ;;  %v823_v34 = vpop.eup %822 }
 0x13b   :  { %798 = vrot.lane.b32.xlu1 %v797_v16, %s965_s25  ;;  %830 = vpow2.f32 %v764_v29  ;;  %v490_v38 = vadd.f32 1.0, %v823_v34  ;;  %v807_v29 = vpack.i.bf16 %v690_v22, %v632_v21 }
 0x13c   :  { %832 = vrcp.f32 %v374_v30 }
 0x13d   :  { %803 = vrot.lane.b32.xlu0 %v802_v17, %s965_s25  ;;  %834 = vpow2.f32 %v765_v32 }
 0x13e   :  { %836 = vrcp.f32 %v432_v33 }
 0x13f   :  { %838 = vrcp.f32 %v490_v38 }
 0x142   :  { %v1086_v36 = vpop.eup %824 }
 0x143   :  { %v827_v39 = vpop.eup %826  ;;  %v263_v40 = vsub.f32 1.0, %v1086_v36  ;;  %v262_v43 = vmul.f32 %v1086_v36, %v260_v37 }
 0x144   :  { %v1089_v41 = vpop.eup %828  ;;  %v548_v45 = vadd.f32 1.0, %v827_v39 }
 0x145   :  { %v831_v47 = vpop.eup %830  ;;  %v320_v49 = vsub.f32 1.0, %v1089_v41 }
 0x146   :  { %v1095_v50 = vpop.eup %832  ;;  %840 = vrcp.f32 %v548_v45  ;;  %v606_v53 = vadd.f32 1.0, %v831_v47 }
 0x147   :  { %v835_v55 = vpop.eup %834  ;;  %v378_v57 = vsub.f32 1.0, %v1095_v50 }
 0x148   :  { %v1102_v58 = vpop.eup %836  ;;  %v664_v61 = vadd.f32 1.0, %v835_v55  ;;  %842 = vrcp.f32 %v606_v53 }
 0x149   :  { %v436_v63 = vsub.f32 1.0, %v1102_v58  ;;  %v1109_v1 = vpop.eup %838 }
 0x14a   :  { %844 = vrcp.f32 %v664_v61  ;;  %v494_v9 = vsub.f32 1.0, %v1109_v1 }
 0x150   :  { %v1116_v10 = vpop.eup %840 }
 0x151   :  { %v552_v16 = vsub.f32 1.0, %v1116_v10 }
 0x152   :  { %v1123_v18 = vpop.eup %842 }
 0x153   :  { %v610_v25 = vsub.f32 1.0, %v1123_v18 }
 0x154   :  { %v1132_v26 = vpop.eup %844 }
 0x155   :  { %v668_v31 = vsub.f32 1.0, %v1132_v26 }
 0x19b   :  { %v266_v42 = vpop.permute.xlu0 %265 }
 0x19c   :  { %v268_v44 = vmul.f32 %v266_v42, %v263_v40 }
 0x19d   :  { %v323_v46 = vpop.permute.xlu1 %322 }
 0x19e   :  { %v269_v48 = vadd.f32 %v268_v44, %v262_v43  ;;  %v325_v52 = vmul.f32 %v323_v46, %v320_v49 }
 0x19f   :  { %v439_v62 = vpop.permute.xlu0 %438 }
 0x1a0   :  { %v319_v51 = vmul.f32 %v1089_v41, %v269_v48  ;;  %271 = vrot.lane.b32.xlu1 %v269_v48, %s974_s2  ;;  %v441_v2 = vmul.f32 %v439_v62, %v436_v63 }
 0x1a1   :  { %v381_v54 = vpop.permute.xlu1 %380 }
 0x1a2   :  { %v326_v56 = vadd.f32 %v325_v52, %v319_v51  ;;  %v383_v60 = vmul.f32 %v381_v54, %v378_v57 }
 0x1a3   :  { %v555_v15 = vpop.permute.xlu0 %554 }
 0x1a4   :  { %v377_v59 = vmul.f32 %v1095_v50, %v326_v56  ;;  %328 = vrot.lane.b32.xlu1 %v326_v56, %s974_s2  ;;  %v557_v19 = vmul.f32 %v555_v15, %v552_v16 }
 0x1a5   :  { %v497_v4 = vpop.permute.xlu1 %496 }
 0x1a6   :  { %v384_v0 = vadd.f32 %v383_v60, %v377_v59  ;;  %v499_v12 = vmul.f32 %v497_v4, %v494_v9 }
 0x1a7   :  { %v671_v30 = vpop.permute.xlu0 %670 }
 0x1a8   :  { %v435_v3 = vmul.f32 %v1102_v58, %v384_v0  ;;  %386 = vrot.lane.b32.xlu0 %v384_v0, %s974_s2  ;;  %v673_v35 = vmul.f32 %v671_v30, %v668_v31 }
 0x1a9   :  { %v613_v23 = vpop.permute.xlu1 %612 }
 0x1aa   :  { %v442_v7 = vadd.f32 %v441_v2, %v435_v3  ;;  %v615_v28 = vmul.f32 %v613_v23, %v610_v25 }
 0x1ab   :  { %v794_v37 = vpop.permute.xlu0 %793 }
 0x1ac   :  { %v493_v11 = vmul.f32 %v1109_v1, %v442_v7  ;;  %444 = vrot.lane.b32.xlu0 %v442_v7, %s974_s2  ;;  %v795_v39 = vunpack.i.l.bf16 %v794_v37  ;;  %v796_v43 = vunpack.i.h.bf16 %v794_v37 }
 0x1ad   :  { %v799_v38 = vpop.permute.xlu1 %798 }
 0x1ae   :  { %v500_v17 = vadd.f32 %v499_v12, %v493_v11  ;;  %v288_v44 = vmul.f32 %v795_v39, %v263_v40  ;;  %v346_v51 = vmul.f32 %v796_v43, %v320_v49  ;;  %v800_v52 = vunpack.i.l.bf16 %v799_v38 }
 0x1af   :  { %v804_v47 = vpop.permute.xlu0 %803  ;;  %v801_v59 = vunpack.i.h.bf16 %v799_v38 }
 0x1b0   :  { %v551_v20 = vmul.f32 %v1116_v10, %v500_v17  ;;  %502 = vrot.lane.b32.xlu1 %v500_v17, %s974_s2  ;;  %v404_v40 = vmul.f32 %v800_v52, %v378_v57  ;;  %v805_v3 = vunpack.i.l.bf16 %v804_v47  ;;  %v806_v7 = vunpack.i.h.bf16 %v804_v47 }
 0x1b2   :  { %v558_v24 = vadd.f32 %v557_v19, %v551_v20  ;;  %v520_v12 = vmul.f32 %v805_v3, %v494_v9  ;;  %v578_v19 = vmul.f32 %v806_v7, %v552_v16 }
 0x1b4   :  { %v609_v27 = vmul.f32 %v1123_v18, %v558_v24  ;;  %560 = vrot.lane.b32.xlu1 %v558_v24, %s974_s2 }
 0x1b6   :  { %v616_v32 = vadd.f32 %v615_v28, %v609_v27 }
 0x1b8   :  { %v667_v33 = vmul.f32 %v1132_v26, %v616_v32  ;;  %808 = vrot.lane.b32.xlu1 %v807_v29, %s965_s25  ;;  %618 = vrot.lane.b32.xlu0 %v616_v32, %s974_s2 }
 0x1ba   :  { %v1144_v34 = vadd.f32 %v673_v35, %v667_v33 }
 0x1bc   :  { %676 = vrot.lane.b32.xlu0 %v1144_v34, %s974_s2 }
 0x212   :  { %v272_v42 = vpop.permute.xlu1 %271 }
 0x213   :  { %v274_v45 = vmul.f32 %v1086_v36, %v272_v42 }
 0x215   :  { %v289_v46 = vadd.f32 %v288_v44, %v274_v45 }
 0x216   :  { %v329_v48 = vpop.permute.xlu1 %328 }
 0x217   :  { %v290_v53 = vpack.c.bf16 %v289_v46, %v289_v46  ;;  %v331_v54 = vmul.f32 %v1089_v41, %v329_v48  ;;  %v462_v41 = vmul.f32 %v801_v59, %v436_v63 }
 0x219   :  { %v347_v55 = vadd.f32 %v346_v51, %v331_v54  ;;  %v298_v56 = vrot.slane %v290_v53, %v1046_v8 }
 0x21a   :  { %v387_v60 = vpop.permute.xlu0 %386 }
 0x21b   :  { %v348_v61 = vpack.c.bf16 %v347_v55, %v347_v55  ;;  %v389_v36 = vmul.f32 %v1095_v50, %v387_v60  ;;  %v305_v62 = vrot.slane %v298_v56, %v1046_v8 }
 0x21d   :  { %v405_v0 = vadd.f32 %v404_v40, %v389_v36  ;;  %306 = vrot.lane.b32.xlu1 %v305_v62, %s965_s25  ;;  %v356_v49 = vrot.slane %v348_v61, %v1046_v8 }
 0x21e   :  { %v445_v2 = vpop.permute.xlu0 %444 }
 0x21f   :  { %v406_v4 = vpack.c.bf16 %v405_v0, %v405_v0  ;;  %v447_v5 = vmul.f32 %v1102_v58, %v445_v2  ;;  %v363_v57 = vrot.slane %v356_v49, %v1046_v8 }
 0x221   :  { %v463_v6 = vadd.f32 %v462_v41, %v447_v5  ;;  %364 = vrot.lane.b32.xlu0 %v363_v57, %s965_s25  ;;  %v414_v50 = vrot.slane %v406_v4, %v1046_v8 }
 0x222   :  { %v503_v11 = vpop.permute.xlu1 %502 }
 0x223   :  { %v464_v13 = vpack.c.bf16 %v463_v6, %v463_v6  ;;  %v505_v63 = vmul.f32 %v1109_v1, %v503_v11  ;;  %v421_v14 = vrot.slane %v414_v50, %v1046_v8 }
 0x225   :  { %v521_v15 = vadd.f32 %v520_v12, %v505_v63  ;;  %422 = vrot.lane.b32.xlu1 %v421_v14, %s965_s25  ;;  %v472_v58 = vrot.slane %v464_v13, %v1046_v8 }
 0x226   :  { %v561_v17 = vpop.permute.xlu1 %560 }
 0x227   :  { %v522_v20 = vpack.c.bf16 %v521_v15, %v521_v15  ;;  %v563_v21 = vmul.f32 %v1116_v10, %v561_v17  ;;  %v479_v22 = vrot.slane %v472_v58, %v1046_v8 }
 0x229   :  { %v579_v9 = vadd.f32 %v578_v19, %v563_v21  ;;  %480 = vrot.lane.b32.xlu0 %v479_v22, %s965_s25  ;;  %v530_v1 = vrot.slane %v522_v20, %v1046_v8 }
 0x22a   :  { %v809_v23 = vpop.permute.xlu1 %808  ;;  %v619_v24 = vpop.permute.xlu0 %618 }
 0x22b   :  { %v580_v27 = vpack.c.bf16 %v579_v9, %v579_v9  ;;  %v811_v28 = vunpack.i.h.bf16 %v809_v23  ;;  %v810_v29 = vunpack.i.l.bf16 %v809_v23  ;;  %v537_v30 = vrot.slane %v530_v1, %v1046_v8 }
 0x22c   :  { %v621_v32 = vmul.f32 %v1123_v18, %v619_v24 }
 0x22d   :  { %v636_v16 = vmul.f32 %v810_v29, %v610_v25  ;;  %v588_v10 = vrot.slane %v580_v27, %v1046_v8  ;;  %538 = vrot.lane.b32.xlu1 %v537_v30, %s965_s25  ;;  %v694_v33 = vmul.f32 %v811_v28, %v668_v31 }
 0x22e   :  { %v677_v35 = vpop.permute.xlu0 %676 }
 0x22f   :  { %v637_v37 = vadd.f32 %v636_v16, %v621_v32  ;;  %v679_v38 = vmul.f32 %v1132_v26, %v677_v35  ;;  %v595_v39 = vrot.slane %v588_v10, %v1046_v8 }
 0x231   :  { %v638_v42 = vpack.c.bf16 %v637_v37, %v637_v37  ;;  %v695_v43 = vadd.f32 %v694_v33, %v679_v38  ;;  %596 = vrot.lane.b32.xlu0 %v595_v39, %s965_s25 }
 0x233   :  { %v696_v25 = vpack.c.bf16 %v695_v43, %v695_v43  ;;  %v646_v18 = vrot.slane %v638_v42, %v1046_v8 }
 0x235   :  { %v653_v44 = vrot.slane %v646_v18, %v1046_v8  ;;  %v704_v45 = vrot.slane %v696_v25, %v1046_v8 }
 0x237   :  { %654 = vrot.lane.b32.xlu1 %v653_v44, %s965_s25  ;;  %v711_v31 = vrot.slane %v704_v45, %v1046_v8 }
 0x239   :  { %712 = vrot.lane.b32.xlu0 %v711_v31, %s965_s25  ;;  %s977_s25 = smov [#allocation9]  }
 0x23a   :  { %s727_s30 = sshll.u32 %s977_s25, 4  ;;  %s728_s30 = int_to_ptr.vmem [resolvable:$true] %s727_s30 }
 0x23b   :  { %717 = vrot.lane.b32.xlu1 %v1144_v34, %s976_s29  ;;  %s912_s7 = scalar_lea.vmem %s728_s30, 128  ;;  %p917_p11 = scmp.lt.s32.totalorder %s728_s30, %s728_s30 }
 0x23c   :  { %p913_p10 = scmp.ne.s32.totalorder %s728_s30, %s912_s7  ;;  %p918_p12 = scmp.lt.s32.totalorder %s912_s7, %s912_s7 }
 0x23e   :  { %p919_p13 = por %p918_p12, %p917_p11 }
 0x240   :  { %p920_p0 = pnand %p919_p13, %p913_p10 }
 0x28f   :  { %v307_v26 = vpop.permute.xlu1 %306 }
 0x290   :  { %310 = vst.msk [vmem:[#allocation9] sm:$0x1] %vm309_vm4, %v307_v26 }
 0x293   :  { %v365_v46 = vpop.permute.xlu0 %364 }
 0x294   :  { %368 = vst.msk [vmem:[#allocation9 + $0x1] sm:$0x1] %vm309_vm4, %v365_v46 }
 0x297   :  { %v423_v47 = vpop.permute.xlu1 %422 }
 0x298   :  { %426 = vst.msk [vmem:[#allocation9 + $0x2] sm:$0x1] %vm309_vm4, %v423_v47 }
 0x29b   :  { %v481_v48 = vpop.permute.xlu0 %480 }
 0x29c   :  { %484 = vst.msk [vmem:[#allocation9 + $0x3] sm:$0x1] %vm309_vm4, %v481_v48 }
 0x29f   :  { %v539_v51 = vpop.permute.xlu1 %538 }
 0x2a0   :  { %542 = vst.msk [vmem:[#allocation9 + $0x4] sm:$0x1] %vm309_vm4, %v539_v51 }
 0x2a3   :  { %v597_v8 = vpop.permute.xlu0 %596 }
 0x2a4   :  { %600 = vst.msk [vmem:[#allocation9 + $0x5] sm:$0x1] %vm309_vm4, %v597_v8 }
 0x2a9   :  { %v655_v34 = vpop.permute.xlu1 %654 }
 0x2aa   :  { %658 = vst.msk [vmem:[#allocation9 + $0x6] sm:$0x1] %vm309_vm4, %v655_v34 }
 0x2ab   :  { %v713_v52 = vpop.permute.xlu0 %712 }
 0x2ac   :  { %716 = vst.msk [vmem:[#allocation9 + $0x7] sm:$0x1] %vm309_vm4, %v713_v52 }
 0x2ad   :  { %v718_v53 = vpop.permute.xlu1 %717 }
 0x2ae   :  { %923 = shalt.err (!%p920_p0)
}
 0x2af   :  { %s924_s10 = scalar_lea.hbm %s1236_s3, 128 }
 0x2b0   :  { %p925_p1 = scmp.ne.s32.totalorder %s1236_s3, %s924_s10  ;;  %p928_p2 = scmp.lt.u32.totalorder %s924_s10, %s1236_s3 }
 0x2b2   :  { %p930_p3 = pnand %p928_p2, %p925_p1 }
 0x2b4   :  { %933 = shalt.err (!%p930_p3)
}
 0x2b5   :  { %733 = dma.vmem_to_hbm [thread:$0]  %s728_s30, 128, %s1236_s3, [#allocation5], %s968_s1, %s968_s1, %s969_s13   ;;  %721 = vst.msk [vmem:[#allocation10] sm:$0x3] %vm62_vm0, %v718_v53 }
 0x2b6   :  { %s934_s18 = scalar_lea.vmem %s741_s6, 32  ;;  %p939_p5 = scmp.lt.s32.totalorder %s741_s6, %s741_s6 }
 0x2b7   :  { %p935_p4 = scmp.ne.s32.totalorder %s741_s6, %s934_s18  ;;  %p940_p6 = scmp.lt.s32.totalorder %s934_s18, %s934_s18 }
 0x2b9   :  { %p941_p7 = por %p940_p6, %p939_p5 }
 0x2bb   :  { %p942_p8 = pnand %p941_p7, %p935_p4 }
 0x2bd   :  { %945 = shalt.err (!%p942_p8)
}
 0x2be   :  { %s946_s21 = scalar_lea.hbm %s1237_s4, 32 }
 0x2bf   :  { %p947_p9 = scmp.ne.s32.totalorder %s1237_s4, %s946_s21  ;;  %p950_p10 = scmp.lt.u32.totalorder %s946_s21, %s1237_s4 }
 0x2c1   :  { %p952_p11 = pnand %p950_p10, %p947_p9 }
 0x2c3   :  { %955 = shalt.err (!%p952_p11)
}
 0x2c4   :  { %743 = dma.vmem_to_hbm [thread:$0]  %s741_s6, 32, %s1237_s4, [#allocation11]  }
 0x2c5   :  { %960 = dma.done.wait [#allocation5], 128  }
 0x2c6   :  { %961 = vsyncadd [#allocation5], 4294967168 }
 0x2c7   :  { %962 = dma.done.wait [#allocation11], 32  }
 0x2c8   :  { %963 = vsyncadd [#allocation11], 4294967264 }
 0x2c9   :  { %750 = vsyncpa [#allocation4], 1 }
 0x2ca   :  { %751 = vsyncpa [#allocation7], 1 }
 0x2cb   :  { %752 = vsyncpa [#allocation5], 1 }
 0x2cc   :  { %753 = vsyncpa [#allocation11], 1 }

</bundles_post_ra>
